<compile_context>
chip_gen: v6e
topology: v6e:2x2x1
jax: 0.10.0
libtpu: 0.0.40
codegen_flags: <defaults>
</compile_context>

<pallas_src>
import functools

import numpy as np
import jax
import jax.numpy as jnp
from jax.experimental import pallas as pl
from jax.experimental.pallas import tpu as pltpu


def _cdiv(a, b):
    return -(-a // b)


def _round_up(v, m):
    return _cdiv(v, m) * m


def _scoped_vmem_cap():
    """Per-TensorCore physical VMEM minus headroom (v5e/v6e 128 MiB, v7x 64 MiB)."""
    cap = 64 << 20                      # conservative default (v7x-sized)
    try:
        cap = int(pltpu.get_tpu_info().vmem_capacity_bytes)
    except Exception:
        pass
    return max(32 << 20, cap - (8 << 20))


# ----------------------------------------------------------------------------
# Pallas kernel: one T-tile of conv1d('same') + bias + LeakyReLU
# ----------------------------------------------------------------------------
def _conv_leaky_kernel(l_ref, x_ref, r_ref, w_ref, b_ref, o_ref, win_ref,
                       acc_ref, *, K, pad, tile_t, seq_len, cdtype, mask_main):
    # l_ref : (1, Cin, 128)       left-neighbour 128 cols  [t0-128, t0)
    # x_ref : (1, Cin, tile_t)    main cols                [t0, t0+tile_t)
    # r_ref : (1, Cin, 128)       right-neighbour 128 cols [t0+tile_t, +128)
    # w_ref : (K, Cout, Cin)      weights (compute dtype)
    # b_ref : (Cout, 1)           bias (f32)
    # o_ref : (1, Cout, tile_t)
    # win_ref: (Cin, tile_t+256)  VMEM window scratch (compute dtype)
    # acc_ref: (Cout, tile_t)     VMEM f32 accumulator
    ti = pl.program_id(1)
    t0 = ti * tile_t
    H = 128                                      # halo width (one lane block)

    # --- assemble the zero-padded 'same' window; all scratch stores are
    #     lane-aligned.  window col c <-> global input col (t0 - H + c).
    win_ref[:, :H] = jnp.where(ti > 0, l_ref[0], 0).astype(cdtype)
    if mask_main:                                # last tile may read past T
        col = jax.lax.broadcasted_iota(jnp.int32, (1, tile_t), 1) + t0
        win_ref[:, H:H + tile_t] = jnp.where(col < seq_len,
                                             x_ref[0], 0).astype(cdtype)
    else:
        win_ref[:, H:H + tile_t] = x_ref[0].astype(cdtype)
    colr = jax.lax.broadcasted_iota(jnp.int32, (1, H), 1) + (t0 + tile_t)
    win_ref[:, H + tile_t:] = jnp.where(colr < seq_len,
                                        r_ref[0], 0).astype(cdtype)

    # --- K per-tap MXU matmuls straight from the window (no im2col copy),
    #     f32 accumulation.  Operands are ref slices so only the vregs each
    #     tap needs are loaded.
    base = H - pad
    acc_ref[...] = jnp.dot(w_ref[0], win_ref[:, base:base + tile_t],
                           preferred_element_type=jnp.float32)
    for k in range(1, K):                        # static unroll
        acc_ref[...] += jnp.dot(w_ref[k],
                                win_ref[:, base + k:base + k + tile_t],
                                preferred_element_type=jnp.float32)

    acc = acc_ref[...] + b_ref[...]              # bias (f32)
    acc = jnp.where(acc >= 0, acc, 0.01 * acc)   # nn.LeakyReLU default slope
    o_ref[0] = acc.astype(o_ref.dtype)


# ----------------------------------------------------------------------------
# Wrapper: Downsampler.forward
# ----------------------------------------------------------------------------
def downsampler_forward(x, w, b, *, tile_t=1024, compute_dtype=None,
                        single_buffer_consts=True):
    """Conv1d(padding='same', odd K) + LeakyReLU.

    x: (B, Cin, T), w: (Cout, Cin, K), b: (Cout,) -> (B, Cout, T) in x.dtype.
    compute_dtype: matmul operand dtype (None -> x.dtype); accumulation is f32.
    """
    B, Cin, T = x.shape
    Cout, Cin_w, K = w.shape
    assert Cin_w == Cin, (Cin_w, Cin)
    assert K % 2 == 1, "only odd kernel sizes (WaveUNet uses 15/5/1)"
    # TODO(synk): even kernel sizes need PyTorch's asymmetric 'same' padding.
    pad = (K - 1) // 2
    assert pad <= 128, "halo wider than one 128-lane block"

    out_dtype = x.dtype
    cdtype = out_dtype if compute_dtype is None else compute_dtype

    # Tiny-Cin layers (e.g. mono first layer, Cin=1): pad channels to 8 once so
    # the per-tap contraction is sublane-aligned.  Negligible extra bytes.
    if Cin < 8:
        x = jnp.pad(x, ((0, 0), (0, 8 - Cin), (0, 0)))
        w = jnp.pad(w, ((0, 0), (0, 8 - Cin), (0, 0)))
        Cin = 8

    x_isz = x.dtype.itemsize
    c_isz = np.dtype(cdtype).itemsize

    def vmem_est(t):
        n_w = 1 if single_buffer_consts else 2
        return (2 * (Cin * t + 2 * Cin * 128) * x_isz      # in blocks (2x buf)
                + 2 * Cout * t * out_dtype.itemsize        # out blocks (2x buf)
                + n_w * (K * Cout * Cin * c_isz + Cout * 4)  # weights + bias
                + Cin * (t + 256) * c_isz                   # window scratch
                + Cout * t * 4)                             # f32 accumulator

    # tile_t selection: big tiles amortize per-grid-step overhead (~0.35 us),
    # but keep >=4 grid steps (pipelining / both v7x TensorCores) and stay
    # within the per-generation VMEM budget.
    cap = _scoped_vmem_cap()
    tt = max(128, _round_up(min(tile_t, _round_up(T, 128)), 128))
    while tt >= 512 and B * _cdiv(T, tt) < 4:
        tt = max(256, (tt // 2) // 128 * 128)
    while tt > 256 and vmem_est(tt) + (4 << 20) > cap:
        tt = max(256, (tt // 2) // 128 * 128)

    num_t = _cdiv(T, tt)
    hb = tt // 128                        # halo block-index scale
    last128 = _cdiv(T, 128) - 1           # last valid 128-col block index
    vmem_limit = int(min(max(vmem_est(tt) * 5 // 4, 32 << 20), cap))

    kernel = functools.partial(_conv_leaky_kernel, K=K, pad=pad, tile_t=tt,
                               seq_len=T, cdtype=cdtype,
                               mask_main=(T % tt != 0))

    w3 = jnp.transpose(w, (2, 0, 1)).astype(cdtype)          # (K, Cout, Cin)
    b2 = b.astype(jnp.float32).reshape(Cout, 1)

    def build(single_buffer):
        ckw = {}
        if single_buffer and hasattr(pl, "Buffered"):
            ckw = dict(pipeline_mode=pl.Buffered(1))  # constants: one buffer
        in_specs = [
            # left halo (contents ignored / zeroed for the first tile)
            pl.BlockSpec((1, Cin, 128),
                         lambda bi, ti: (bi, 0, jnp.maximum(ti * hb - 1, 0))),
            # main tile
            pl.BlockSpec((1, Cin, tt), lambda bi, ti: (bi, 0, ti)),
            # right halo (clamped for the last tile; masked in-kernel)
            pl.BlockSpec((1, Cin, 128),
                         lambda bi, ti: (bi, 0,
                                         jnp.minimum((ti + 1) * hb, last128))),
            # resident weights / bias (constant index -> fetched once)
            pl.BlockSpec((K, Cout, Cin), lambda bi, ti: (0, 0, 0), **ckw),
            pl.BlockSpec((Cout, 1), lambda bi, ti: (0, 0), **ckw),
        ]
        return pl.pallas_call(
            kernel,
            out_shape=jax.ShapeDtypeStruct((B, Cout, T), out_dtype),
            grid_spec=pltpu.PrefetchScalarGridSpec(
                num_scalar_prefetch=0,
                grid=(B, num_t),
                in_specs=in_specs,
                out_specs=pl.BlockSpec((1, Cout, tt),
                                       lambda bi, ti: (bi, 0, ti)),
                scratch_shapes=[pltpu.VMEM((Cin, tt + 256), cdtype),
                                pltpu.VMEM((Cout, tt), jnp.float32)]),
            compiler_params=pltpu.CompilerParams(
                dimension_semantics=("parallel", "parallel"),
                vmem_limit_bytes=vmem_limit),
        )

    try:
        return build(single_buffer_consts)(x, x, x, w3, b2)
    except Exception:
        if not single_buffer_consts:
            raise
        # Fallback if this jax build rejects pl.Buffered(1): identical kernel,
        # default double-buffered constants.
        return build(False)(x, x, x, w3, b2)


# ----------------------------------------------------------------------------
# Pure-JAX reference for correctness checking
# ----------------------------------------------------------------------------
def downsampler_ref(x, w, b):
    y = jax.lax.conv_general_dilated(
        x, w, window_strides=(1,), padding='SAME',
        dimension_numbers=('NCH', 'OIH', 'NCH'),
        precision=jax.lax.Precision.HIGHEST)
    y = y + b[None, :, None]
    return jnp.where(y >= 0, y, 0.01 * y)


# ----------------------------------------------------------------------------
if __name__ == "__main__":
    key = jax.random.PRNGKey(0)
    # (B, Cin, Cout, K, T, compute_dtype, rtol, atol)
    configs = [
        (2, 1, 12, 15, 200, None, 2e-3, 2e-3),          # mono first layer, ragged T
        (2, 24, 48, 15, 500, None, 2e-3, 2e-3),          # multi-tile + halo + ragged
        (1, 16, 32, 5, 1000, None, 2e-3, 2e-3),          # B=1: grid re-tiled for cores
        (2, 24, 48, 15, 300, jnp.bfloat16, 5e-2, 1.2e-1),  # bf16 operands, f32 accum
    ]
    for (B, Cin, Cout, K, T, cdt, rtol, atol) in configs:
        key, kx, kw, kb = jax.random.split(key, 4)
        x = jax.random.normal(kx, (B, Cin, T), jnp.float32)
        w = 0.05 * jax.random.normal(kw, (Cout, Cin, K), jnp.float32)
        b = 0.05 * jax.random.normal(kb, (Cout,), jnp.float32)

        out = jax.block_until_ready(downsampler_forward(x, w, b,
                                                        compute_dtype=cdt))
        ref = jax.block_until_ready(downsampler_ref(x, w, b))
        assert out.shape == (B, Cout, T), out.shape
        err = float(jnp.max(jnp.abs(out.astype(jnp.float32) - ref)))
        assert jnp.allclose(out.astype(jnp.float32), ref,
                            rtol=rtol, atol=atol), \
            f"config={(B, Cin, Cout, K, T, cdt)} max err {err}"

    print("KERNEL_OK")
</pallas_src>

<mosaic_0001>
module attributes {stable_mosaic.version = 11 : i64} {
  func.func @_conv_leaky_kernel(%arg0: i32, %arg1: i32, %arg2: memref<1x8x128xf32, #tpu.memory_space<vmem>>, %arg3: memref<1x8x256xf32, #tpu.memory_space<vmem>>, %arg4: memref<1x8x128xf32, #tpu.memory_space<vmem>>, %arg5: memref<15x12x8xf32, #tpu.memory_space<vmem>>, %arg6: memref<12x1xf32, #tpu.memory_space<vmem>>, %arg7: memref<1x12x256xf32, #tpu.memory_space<vmem>>, %arg8: memref<8x512xf32, #tpu.memory_space<vmem>>, %arg9: memref<12x256xf32, #tpu.memory_space<vmem>>) attributes {dimension_semantics = [#tpu.dimension_semantics<parallel>, #tpu.dimension_semantics<parallel>], iteration_bounds = array<i64: 2, 1>, scalar_prefetch = 0 : i64, scratch_operands = 2 : i64, tpu.core_type = #tpu.core_type<tc>, window_params = [{transform_indices = @transform_0, window_bounds = array<i64: 1, 8, 128>}, {transform_indices = @transform_1, window_bounds = array<i64: 1, 8, 256>}, {transform_indices = @transform_2, window_bounds = array<i64: 1, 8, 128>}, {pipeline_mode = #tpu.pipeline_mode<synchronous>, transform_indices = @transform_3, window_bounds = array<i64: 15, 12, 8>}, {pipeline_mode = #tpu.pipeline_mode<synchronous>, transform_indices = @transform_4, window_bounds = array<i64: 12, 1>}, {transform_indices = @transform_5, window_bounds = array<i64: 1, 12, 256>}]} {
    %c256_i32 = arith.constant 256 : i32
    %0 = arith.muli %arg1, %c256_i32 : i32
    %c0_i32 = arith.constant 0 : i32
    %1 = arith.cmpi sgt, %arg1, %c0_i32 : i32
    %c0 = arith.constant 0 : index
    %c0_0 = arith.constant 0 : index
    %c0_1 = arith.constant 0 : index
    %2 = vector.load %arg2[%c0, %c0_0, %c0_1] : memref<1x8x128xf32, #tpu.memory_space<vmem>>, vector<1x8x128xf32>
    %3 = vector.shape_cast %2 : vector<1x8x128xf32> to vector<8x128xf32>
    %c0_i32_2 = arith.constant 0 : i32
    %4 = arith.sitofp %c0_i32_2 : i32 to f32
    %5 = vector.broadcast %4 : f32 to vector<8x128xf32>
    %6 = arith.select %1, %3, %5 : vector<8x128xf32>
    %c0_3 = arith.constant 0 : index
    %c0_4 = arith.constant 0 : index
    %7 = vector.load %arg8[%c0_3, %c0_4] : memref<8x512xf32, #tpu.memory_space<vmem>>, vector<8x128xf32>
    tpu.vector_store %arg8[%c0_3, %c0_4], %6 {strides = array<i32>} : memref<8x512xf32, #tpu.memory_space<vmem>>, vector<8x128xf32>,
    %8 = tpu.iota {dimensions = array<i32: 1>} : vector<1x256xi32>
    %9 = vector.broadcast %0 : i32 to vector<1x256xi32>
    %10 = arith.addi %8, %9 : vector<1x256xi32>
    %c200_i32 = arith.constant 200 : i32
    %11 = vector.broadcast %c200_i32 : i32 to vector<1x256xi32>
    %12 = arith.cmpi slt, %10, %11 : vector<1x256xi32>
    %c0_5 = arith.constant 0 : index
    %c0_6 = arith.constant 0 : index
    %c0_7 = arith.constant 0 : index
    %13 = vector.load %arg3[%c0_5, %c0_6, %c0_7] : memref<1x8x256xf32, #tpu.memory_space<vmem>>, vector<1x8x256xf32>
    %14 = vector.shape_cast %13 : vector<1x8x256xf32> to vector<8x256xf32>
    %c0_i32_8 = arith.constant 0 : i32
    %15 = arith.sitofp %c0_i32_8 : i32 to f32
    %16 = vector.shape_cast %12 : vector<1x256xi1> to vector<1x256xi1>
    %17 = vector.broadcast %16 : vector<1x256xi1> to vector<8x256xi1>
    %18 = vector.broadcast %15 : f32 to vector<8x256xf32>
    %19 = arith.select %17, %14, %18 : vector<8x256xi1>, vector<8x256xf32>
    %c0_9 = arith.constant 0 : index
    %c128 = arith.constant 128 : index
    %20 = vector.load %arg8[%c0_9, %c128] : memref<8x512xf32, #tpu.memory_space<vmem>>, vector<8x256xf32>
    tpu.vector_store %arg8[%c0_9, %c128], %19 {strides = array<i32>} : memref<8x512xf32, #tpu.memory_space<vmem>>, vector<8x256xf32>,
    %21 = tpu.iota {dimensions = array<i32: 1>} : vector<1x128xi32>
    %c256_i32_10 = arith.constant 256 : i32
    %22 = arith.addi %0, %c256_i32_10 : i32
    %23 = vector.broadcast %22 : i32 to vector<1x128xi32>
    %24 = arith.addi %21, %23 : vector<1x128xi32>
    %c200_i32_11 = arith.constant 200 : i32
    %25 = vector.broadcast %c200_i32_11 : i32 to vector<1x128xi32>
    %26 = arith.cmpi slt, %24, %25 : vector<1x128xi32>
    %c0_12 = arith.constant 0 : index
    %c0_13 = arith.constant 0 : index
    %c0_14 = arith.constant 0 : index
    %27 = vector.load %arg4[%c0_12, %c0_13, %c0_14] : memref<1x8x128xf32, #tpu.memory_space<vmem>>, vector<1x8x128xf32>
    %28 = vector.shape_cast %27 : vector<1x8x128xf32> to vector<8x128xf32>
    %c0_i32_15 = arith.constant 0 : i32
    %29 = arith.sitofp %c0_i32_15 : i32 to f32
    %30 = vector.shape_cast %26 : vector<1x128xi1> to vector<1x128xi1>
    %31 = vector.broadcast %30 : vector<1x128xi1> to vector<8x128xi1>
    %32 = vector.broadcast %29 : f32 to vector<8x128xf32>
    %33 = arith.select %31, %28, %32 : vector<8x128xi1>, vector<8x128xf32>
    %c0_16 = arith.constant 0 : index
    %c384 = arith.constant 384 : index
    %34 = vector.load %arg8[%c0_16, %c384] : memref<8x512xf32, #tpu.memory_space<vmem>>, vector<8x128xf32>
    tpu.vector_store %arg8[%c0_16, %c384], %33 {strides = array<i32>} : memref<8x512xf32, #tpu.memory_space<vmem>>, vector<8x128xf32>,
    %c0_17 = arith.constant 0 : index
    %c0_18 = arith.constant 0 : index
    %c0_19 = arith.constant 0 : index
    %35 = vector.load %arg5[%c0_17, %c0_18, %c0_19] : memref<15x12x8xf32, #tpu.memory_space<vmem>>, vector<1x12x8xf32>
    %36 = vector.shape_cast %35 : vector<1x12x8xf32> to vector<12x8xf32>
    %c0_20 = arith.constant 0 : index
    %c121 = arith.constant 121 : index
    %37 = vector.load %arg8[%c0_20, %c121] : memref<8x512xf32, #tpu.memory_space<vmem>>, vector<8x256xf32>
    %cst = arith.constant dense<0.000000e+00> : vector<12x256xf32>
    %38 = tpu.matmul %36, %37, %cst {dimension_numbers = #tpu.dot_dimension_numbers<[1], [0], [0], [1], [0, 0, 1, 1], [], []>} : vector<12x8xf32>, vector<8x256xf32>, vector<12x256xf32> -> vector<12x256xf32>
    %c0_21 = arith.constant 0 : index
    %c0_22 = arith.constant 0 : index
    %39 = vector.load %arg9[%c0_21, %c0_22] : memref<12x256xf32, #tpu.memory_space<vmem>>, vector<12x256xf32>
    tpu.vector_store %arg9[%c0_21, %c0_22], %38 {strides = array<i32>} : memref<12x256xf32, #tpu.memory_space<vmem>>, vector<12x256xf32>,
    %c0_23 = arith.constant 0 : index
    %c0_24 = arith.constant 0 : index
    %40 = vector.load %arg9[%c0_23, %c0_24] : memref<12x256xf32, #tpu.memory_space<vmem>>, vector<12x256xf32>
    %c1 = arith.constant 1 : index
    %c0_25 = arith.constant 0 : index
    %c0_26 = arith.constant 0 : index
    %41 = vector.load %arg5[%c1, %c0_25, %c0_26] : memref<15x12x8xf32, #tpu.memory_space<vmem>>, vector<1x12x8xf32>
    %42 = vector.shape_cast %41 : vector<1x12x8xf32> to vector<12x8xf32>
    %c0_27 = arith.constant 0 : index
    %c122 = arith.constant 122 : index
    %43 = vector.load %arg8[%c0_27, %c122] : memref<8x512xf32, #tpu.memory_space<vmem>>, vector<8x256xf32>
    %cst_28 = arith.constant dense<0.000000e+00> : vector<12x256xf32>
    %44 = tpu.matmul %42, %43, %cst_28 {dimension_numbers = #tpu.dot_dimension_numbers<[1], [0], [0], [1], [0, 0, 1, 1], [], []>} : vector<12x8xf32>, vector<8x256xf32>, vector<12x256xf32> -> vector<12x256xf32>
    %45 = arith.addf %40, %44 : vector<12x256xf32>
    %c0_29 = arith.constant 0 : index
    %c0_30 = arith.constant 0 : index
    %46 = vector.load %arg9[%c0_29, %c0_30] : memref<12x256xf32, #tpu.memory_space<vmem>>, vector<12x256xf32>
    tpu.vector_store %arg9[%c0_29, %c0_30], %45 {strides = array<i32>} : memref<12x256xf32, #tpu.memory_space<vmem>>, vector<12x256xf32>,
    %c0_31 = arith.constant 0 : index
    %c0_32 = arith.constant 0 : index
    %47 = vector.load %arg9[%c0_31, %c0_32] : memref<12x256xf32, #tpu.memory_space<vmem>>, vector<12x256xf32>
    %c2 = arith.constant 2 : index
    %c0_33 = arith.constant 0 : index
    %c0_34 = arith.constant 0 : index
    %48 = vector.load %arg5[%c2, %c0_33, %c0_34] : memref<15x12x8xf32, #tpu.memory_space<vmem>>, vector<1x12x8xf32>
    %49 = vector.shape_cast %48 : vector<1x12x8xf32> to vector<12x8xf32>
    %c0_35 = arith.constant 0 : index
    %c123 = arith.constant 123 : index
    %50 = vector.load %arg8[%c0_35, %c123] : memref<8x512xf32, #tpu.memory_space<vmem>>, vector<8x256xf32>
    %cst_36 = arith.constant dense<0.000000e+00> : vector<12x256xf32>
    %51 = tpu.matmul %49, %50, %cst_36 {dimension_numbers = #tpu.dot_dimension_numbers<[1], [0], [0], [1], [0, 0, 1, 1], [], []>} : vector<12x8xf32>, vector<8x256xf32>, vector<12x256xf32> -> vector<12x256xf32>
    %52 = arith.addf %47, %51 : vector<12x256xf32>
    %c0_37 = arith.constant 0 : index
    %c0_38 = arith.constant 0 : index
    %53 = vector.load %arg9[%c0_37, %c0_38] : memref<12x256xf32, #tpu.memory_space<vmem>>, vector<12x256xf32>
    tpu.vector_store %arg9[%c0_37, %c0_38], %52 {strides = array<i32>} : memref<12x256xf32, #tpu.memory_space<vmem>>, vector<12x256xf32>,
    %c0_39 = arith.constant 0 : index
    %c0_40 = arith.constant 0 : index
    %54 = vector.load %arg9[%c0_39, %c0_40] : memref<12x256xf32, #tpu.memory_space<vmem>>, vector<12x256xf32>
    %c3 = arith.constant 3 : index
    %c0_41 = arith.constant 0 : index
    %c0_42 = arith.constant 0 : index
    %55 = vector.load %arg5[%c3, %c0_41, %c0_42] : memref<15x12x8xf32, #tpu.memory_space<vmem>>, vector<1x12x8xf32>
    %56 = vector.shape_cast %55 : vector<1x12x8xf32> to vector<12x8xf32>
    %c0_43 = arith.constant 0 : index
    %c124 = arith.constant 124 : index
    %57 = vector.load %arg8[%c0_43, %c124] : memref<8x512xf32, #tpu.memory_space<vmem>>, vector<8x256xf32>
    %cst_44 = arith.constant dense<0.000000e+00> : vector<12x256xf32>
    %58 = tpu.matmul %56, %57, %cst_44 {dimension_numbers = #tpu.dot_dimension_numbers<[1], [0], [0], [1], [0, 0, 1, 1], [], []>} : vector<12x8xf32>, vector<8x256xf32>, vector<12x256xf32> -> vector<12x256xf32>
    %59 = arith.addf %54, %58 : vector<12x256xf32>
    %c0_45 = arith.constant 0 : index
    %c0_46 = arith.constant 0 : index
    %60 = vector.load %arg9[%c0_45, %c0_46] : memref<12x256xf32, #tpu.memory_space<vmem>>, vector<12x256xf32>
    tpu.vector_store %arg9[%c0_45, %c0_46], %59 {strides = array<i32>} : memref<12x256xf32, #tpu.memory_space<vmem>>, vector<12x256xf32>,
    %c0_47 = arith.constant 0 : index
    %c0_48 = arith.constant 0 : index
    %61 = vector.load %arg9[%c0_47, %c0_48] : memref<12x256xf32, #tpu.memory_space<vmem>>, vector<12x256xf32>
    %c4 = arith.constant 4 : index
    %c0_49 = arith.constant 0 : index
    %c0_50 = arith.constant 0 : index
    %62 = vector.load %arg5[%c4, %c0_49, %c0_50] : memref<15x12x8xf32, #tpu.memory_space<vmem>>, vector<1x12x8xf32>
    %63 = vector.shape_cast %62 : vector<1x12x8xf32> to vector<12x8xf32>
    %c0_51 = arith.constant 0 : index
    %c125 = arith.constant 125 : index
    %64 = vector.load %arg8[%c0_51, %c125] : memref<8x512xf32, #tpu.memory_space<vmem>>, vector<8x256xf32>
    %cst_52 = arith.constant dense<0.000000e+00> : vector<12x256xf32>
    %65 = tpu.matmul %63, %64, %cst_52 {dimension_numbers = #tpu.dot_dimension_numbers<[1], [0], [0], [1], [0, 0, 1, 1], [], []>} : vector<12x8xf32>, vector<8x256xf32>, vector<12x256xf32> -> vector<12x256xf32>
    %66 = arith.addf %61, %65 : vector<12x256xf32>
    %c0_53 = arith.constant 0 : index
    %c0_54 = arith.constant 0 : index
    %67 = vector.load %arg9[%c0_53, %c0_54] : memref<12x256xf32, #tpu.memory_space<vmem>>, vector<12x256xf32>
    tpu.vector_store %arg9[%c0_53, %c0_54], %66 {strides = array<i32>} : memref<12x256xf32, #tpu.memory_space<vmem>>, vector<12x256xf32>,
    %c0_55 = arith.constant 0 : index
    %c0_56 = arith.constant 0 : index
    %68 = vector.load %arg9[%c0_55, %c0_56] : memref<12x256xf32, #tpu.memory_space<vmem>>, vector<12x256xf32>
    %c5 = arith.constant 5 : index
    %c0_57 = arith.constant 0 : index
    %c0_58 = arith.constant 0 : index
    %69 = vector.load %arg5[%c5, %c0_57, %c0_58] : memref<15x12x8xf32, #tpu.memory_space<vmem>>, vector<1x12x8xf32>
    %70 = vector.shape_cast %69 : vector<1x12x8xf32> to vector<12x8xf32>
    %c0_59 = arith.constant 0 : index
    %c126 = arith.constant 126 : index
    %71 = vector.load %arg8[%c0_59, %c126] : memref<8x512xf32, #tpu.memory_space<vmem>>, vector<8x256xf32>
    %cst_60 = arith.constant dense<0.000000e+00> : vector<12x256xf32>
    %72 = tpu.matmul %70, %71, %cst_60 {dimension_numbers = #tpu.dot_dimension_numbers<[1], [0], [0], [1], [0, 0, 1, 1], [], []>} : vector<12x8xf32>, vector<8x256xf32>, vector<12x256xf32> -> vector<12x256xf32>
    %73 = arith.addf %68, %72 : vector<12x256xf32>
    %c0_61 = arith.constant 0 : index
    %c0_62 = arith.constant 0 : index
    %74 = vector.load %arg9[%c0_61, %c0_62] : memref<12x256xf32, #tpu.memory_space<vmem>>, vector<12x256xf32>
    tpu.vector_store %arg9[%c0_61, %c0_62], %73 {strides = array<i32>} : memref<12x256xf32, #tpu.memory_space<vmem>>, vector<12x256xf32>,
    %c0_63 = arith.constant 0 : index
    %c0_64 = arith.constant 0 : index
    %75 = vector.load %arg9[%c0_63, %c0_64] : memref<12x256xf32, #tpu.memory_space<vmem>>, vector<12x256xf32>
    %c6 = arith.constant 6 : index
    %c0_65 = arith.constant 0 : index
    %c0_66 = arith.constant 0 : index
    %76 = vector.load %arg5[%c6, %c0_65, %c0_66] : memref<15x12x8xf32, #tpu.memory_space<vmem>>, vector<1x12x8xf32>
    %77 = vector.shape_cast %76 : vector<1x12x8xf32> to vector<12x8xf32>
    %c0_67 = arith.constant 0 : index
    %c127 = arith.constant 127 : index
    %78 = vector.load %arg8[%c0_67, %c127] : memref<8x512xf32, #tpu.memory_space<vmem>>, vector<8x256xf32>
    %cst_68 = arith.constant dense<0.000000e+00> : vector<12x256xf32>
    %79 = tpu.matmul %77, %78, %cst_68 {dimension_numbers = #tpu.dot_dimension_numbers<[1], [0], [0], [1], [0, 0, 1, 1], [], []>} : vector<12x8xf32>, vector<8x256xf32>, vector<12x256xf32> -> vector<12x256xf32>
    %80 = arith.addf %75, %79 : vector<12x256xf32>
    %c0_69 = arith.constant 0 : index
    %c0_70 = arith.constant 0 : index
    %81 = vector.load %arg9[%c0_69, %c0_70] : memref<12x256xf32, #tpu.memory_space<vmem>>, vector<12x256xf32>
    tpu.vector_store %arg9[%c0_69, %c0_70], %80 {strides = array<i32>} : memref<12x256xf32, #tpu.memory_space<vmem>>, vector<12x256xf32>,
    %c0_71 = arith.constant 0 : index
    %c0_72 = arith.constant 0 : index
    %82 = vector.load %arg9[%c0_71, %c0_72] : memref<12x256xf32, #tpu.memory_space<vmem>>, vector<12x256xf32>
    %c7 = arith.constant 7 : index
    %c0_73 = arith.constant 0 : index
    %c0_74 = arith.constant 0 : index
    %83 = vector.load %arg5[%c7, %c0_73, %c0_74] : memref<15x12x8xf32, #tpu.memory_space<vmem>>, vector<1x12x8xf32>
    %84 = vector.shape_cast %83 : vector<1x12x8xf32> to vector<12x8xf32>
    %c0_75 = arith.constant 0 : index
    %c128_76 = arith.constant 128 : index
    %85 = vector.load %arg8[%c0_75, %c128_76] : memref<8x512xf32, #tpu.memory_space<vmem>>, vector<8x256xf32>
    %cst_77 = arith.constant dense<0.000000e+00> : vector<12x256xf32>
    %86 = tpu.matmul %84, %85, %cst_77 {dimension_numbers = #tpu.dot_dimension_numbers<[1], [0], [0], [1], [0, 0, 1, 1], [], []>} : vector<12x8xf32>, vector<8x256xf32>, vector<12x256xf32> -> vector<12x256xf32>
    %87 = arith.addf %82, %86 : vector<12x256xf32>
    %c0_78 = arith.constant 0 : index
    %c0_79 = arith.constant 0 : index
    %88 = vector.load %arg9[%c0_78, %c0_79] : memref<12x256xf32, #tpu.memory_space<vmem>>, vector<12x256xf32>
    tpu.vector_store %arg9[%c0_78, %c0_79], %87 {strides = array<i32>} : memref<12x256xf32, #tpu.memory_space<vmem>>, vector<12x256xf32>,
    %c0_80 = arith.constant 0 : index
    %c0_81 = arith.constant 0 : index
    %89 = vector.load %arg9[%c0_80, %c0_81] : memref<12x256xf32, #tpu.memory_space<vmem>>, vector<12x256xf32>
    %c8 = arith.constant 8 : index
    %c0_82 = arith.constant 0 : index
    %c0_83 = arith.constant 0 : index
    %90 = vector.load %arg5[%c8, %c0_82, %c0_83] : memref<15x12x8xf32, #tpu.memory_space<vmem>>, vector<1x12x8xf32>
    %91 = vector.shape_cast %90 : vector<1x12x8xf32> to vector<12x8xf32>
    %c0_84 = arith.constant 0 : index
    %c129 = arith.constant 129 : index
    %92 = vector.load %arg8[%c0_84, %c129] : memref<8x512xf32, #tpu.memory_space<vmem>>, vector<8x256xf32>
    %cst_85 = arith.constant dense<0.000000e+00> : vector<12x256xf32>
    %93 = tpu.matmul %91, %92, %cst_85 {dimension_numbers = #tpu.dot_dimension_numbers<[1], [0], [0], [1], [0, 0, 1, 1], [], []>} : vector<12x8xf32>, vector<8x256xf32>, vector<12x256xf32> -> vector<12x256xf32>
    %94 = arith.addf %89, %93 : vector<12x256xf32>
    %c0_86 = arith.constant 0 : index
    %c0_87 = arith.constant 0 : index
    %95 = vector.load %arg9[%c0_86, %c0_87] : memref<12x256xf32, #tpu.memory_space<vmem>>, vector<12x256xf32>
    tpu.vector_store %arg9[%c0_86, %c0_87], %94 {strides = array<i32>} : memref<12x256xf32, #tpu.memory_space<vmem>>, vector<12x256xf32>,
    %c0_88 = arith.constant 0 : index
    %c0_89 = arith.constant 0 : index
    %96 = vector.load %arg9[%c0_88, %c0_89] : memref<12x256xf32, #tpu.memory_space<vmem>>, vector<12x256xf32>
    %c9 = arith.constant 9 : index
    %c0_90 = arith.constant 0 : index
    %c0_91 = arith.constant 0 : index
    %97 = vector.load %arg5[%c9, %c0_90, %c0_91] : memref<15x12x8xf32, #tpu.memory_space<vmem>>, vector<1x12x8xf32>
    %98 = vector.shape_cast %97 : vector<1x12x8xf32> to vector<12x8xf32>
    %c0_92 = arith.constant 0 : index
    %c130 = arith.constant 130 : index
    %99 = vector.load %arg8[%c0_92, %c130] : memref<8x512xf32, #tpu.memory_space<vmem>>, vector<8x256xf32>
    %cst_93 = arith.constant dense<0.000000e+00> : vector<12x256xf32>
    %100 = tpu.matmul %98, %99, %cst_93 {dimension_numbers = #tpu.dot_dimension_numbers<[1], [0], [0], [1], [0, 0, 1, 1], [], []>} : vector<12x8xf32>, vector<8x256xf32>, vector<12x256xf32> -> vector<12x256xf32>
    %101 = arith.addf %96, %100 : vector<12x256xf32>
    %c0_94 = arith.constant 0 : index
    %c0_95 = arith.constant 0 : index
    %102 = vector.load %arg9[%c0_94, %c0_95] : memref<12x256xf32, #tpu.memory_space<vmem>>, vector<12x256xf32>
    tpu.vector_store %arg9[%c0_94, %c0_95], %101 {strides = array<i32>} : memref<12x256xf32, #tpu.memory_space<vmem>>, vector<12x256xf32>,
    %c0_96 = arith.constant 0 : index
    %c0_97 = arith.constant 0 : index
    %103 = vector.load %arg9[%c0_96, %c0_97] : memref<12x256xf32, #tpu.memory_space<vmem>>, vector<12x256xf32>
    %c10 = arith.constant 10 : index
    %c0_98 = arith.constant 0 : index
    %c0_99 = arith.constant 0 : index
    %104 = vector.load %arg5[%c10, %c0_98, %c0_99] : memref<15x12x8xf32, #tpu.memory_space<vmem>>, vector<1x12x8xf32>
    %105 = vector.shape_cast %104 : vector<1x12x8xf32> to vector<12x8xf32>
    %c0_100 = arith.constant 0 : index
    %c131 = arith.constant 131 : index
    %106 = vector.load %arg8[%c0_100, %c131] : memref<8x512xf32, #tpu.memory_space<vmem>>, vector<8x256xf32>
    %cst_101 = arith.constant dense<0.000000e+00> : vector<12x256xf32>
    %107 = tpu.matmul %105, %106, %cst_101 {dimension_numbers = #tpu.dot_dimension_numbers<[1], [0], [0], [1], [0, 0, 1, 1], [], []>} : vector<12x8xf32>, vector<8x256xf32>, vector<12x256xf32> -> vector<12x256xf32>
    %108 = arith.addf %103, %107 : vector<12x256xf32>
    %c0_102 = arith.constant 0 : index
    %c0_103 = arith.constant 0 : index
    %109 = vector.load %arg9[%c0_102, %c0_103] : memref<12x256xf32, #tpu.memory_space<vmem>>, vector<12x256xf32>
    tpu.vector_store %arg9[%c0_102, %c0_103], %108 {strides = array<i32>} : memref<12x256xf32, #tpu.memory_space<vmem>>, vector<12x256xf32>,
    %c0_104 = arith.constant 0 : index
    %c0_105 = arith.constant 0 : index
    %110 = vector.load %arg9[%c0_104, %c0_105] : memref<12x256xf32, #tpu.memory_space<vmem>>, vector<12x256xf32>
    %c11 = arith.constant 11 : index
    %c0_106 = arith.constant 0 : index
    %c0_107 = arith.constant 0 : index
    %111 = vector.load %arg5[%c11, %c0_106, %c0_107] : memref<15x12x8xf32, #tpu.memory_space<vmem>>, vector<1x12x8xf32>
    %112 = vector.shape_cast %111 : vector<1x12x8xf32> to vector<12x8xf32>
    %c0_108 = arith.constant 0 : index
    %c132 = arith.constant 132 : index
    %113 = vector.load %arg8[%c0_108, %c132] : memref<8x512xf32, #tpu.memory_space<vmem>>, vector<8x256xf32>
    %cst_109 = arith.constant dense<0.000000e+00> : vector<12x256xf32>
    %114 = tpu.matmul %112, %113, %cst_109 {dimension_numbers = #tpu.dot_dimension_numbers<[1], [0], [0], [1], [0, 0, 1, 1], [], []>} : vector<12x8xf32>, vector<8x256xf32>, vector<12x256xf32> -> vector<12x256xf32>
    %115 = arith.addf %110, %114 : vector<12x256xf32>
    %c0_110 = arith.constant 0 : index
    %c0_111 = arith.constant 0 : index
    %116 = vector.load %arg9[%c0_110, %c0_111] : memref<12x256xf32, #tpu.memory_space<vmem>>, vector<12x256xf32>
    tpu.vector_store %arg9[%c0_110, %c0_111], %115 {strides = array<i32>} : memref<12x256xf32, #tpu.memory_space<vmem>>, vector<12x256xf32>,
    %c0_112 = arith.constant 0 : index
    %c0_113 = arith.constant 0 : index
    %117 = vector.load %arg9[%c0_112, %c0_113] : memref<12x256xf32, #tpu.memory_space<vmem>>, vector<12x256xf32>
    %c12 = arith.constant 12 : index
    %c0_114 = arith.constant 0 : index
    %c0_115 = arith.constant 0 : index
    %118 = vector.load %arg5[%c12, %c0_114, %c0_115] : memref<15x12x8xf32, #tpu.memory_space<vmem>>, vector<1x12x8xf32>
    %119 = vector.shape_cast %118 : vector<1x12x8xf32> to vector<12x8xf32>
    %c0_116 = arith.constant 0 : index
    %c133 = arith.constant 133 : index
    %120 = vector.load %arg8[%c0_116, %c133] : memref<8x512xf32, #tpu.memory_space<vmem>>, vector<8x256xf32>
    %cst_117 = arith.constant dense<0.000000e+00> : vector<12x256xf32>
    %121 = tpu.matmul %119, %120, %cst_117 {dimension_numbers = #tpu.dot_dimension_numbers<[1], [0], [0], [1], [0, 0, 1, 1], [], []>} : vector<12x8xf32>, vector<8x256xf32>, vector<12x256xf32> -> vector<12x256xf32>
    %122 = arith.addf %117, %121 : vector<12x256xf32>
    %c0_118 = arith.constant 0 : index
    %c0_119 = arith.constant 0 : index
    %123 = vector.load %arg9[%c0_118, %c0_119] : memref<12x256xf32, #tpu.memory_space<vmem>>, vector<12x256xf32>
    tpu.vector_store %arg9[%c0_118, %c0_119], %122 {strides = array<i32>} : memref<12x256xf32, #tpu.memory_space<vmem>>, vector<12x256xf32>,
    %c0_120 = arith.constant 0 : index
    %c0_121 = arith.constant 0 : index
    %124 = vector.load %arg9[%c0_120, %c0_121] : memref<12x256xf32, #tpu.memory_space<vmem>>, vector<12x256xf32>
    %c13 = arith.constant 13 : index
    %c0_122 = arith.constant 0 : index
    %c0_123 = arith.constant 0 : index
    %125 = vector.load %arg5[%c13, %c0_122, %c0_123] : memref<15x12x8xf32, #tpu.memory_space<vmem>>, vector<1x12x8xf32>
    %126 = vector.shape_cast %125 : vector<1x12x8xf32> to vector<12x8xf32>
    %c0_124 = arith.constant 0 : index
    %c134 = arith.constant 134 : index
    %127 = vector.load %arg8[%c0_124, %c134] : memref<8x512xf32, #tpu.memory_space<vmem>>, vector<8x256xf32>
    %cst_125 = arith.constant dense<0.000000e+00> : vector<12x256xf32>
    %128 = tpu.matmul %126, %127, %cst_125 {dimension_numbers = #tpu.dot_dimension_numbers<[1], [0], [0], [1], [0, 0, 1, 1], [], []>} : vector<12x8xf32>, vector<8x256xf32>, vector<12x256xf32> -> vector<12x256xf32>
    %129 = arith.addf %124, %128 : vector<12x256xf32>
    %c0_126 = arith.constant 0 : index
    %c0_127 = arith.constant 0 : index
    %130 = vector.load %arg9[%c0_126, %c0_127] : memref<12x256xf32, #tpu.memory_space<vmem>>, vector<12x256xf32>
    tpu.vector_store %arg9[%c0_126, %c0_127], %129 {strides = array<i32>} : memref<12x256xf32, #tpu.memory_space<vmem>>, vector<12x256xf32>,
    %c0_128 = arith.constant 0 : index
    %c0_129 = arith.constant 0 : index
    %131 = vector.load %arg9[%c0_128, %c0_129] : memref<12x256xf32, #tpu.memory_space<vmem>>, vector<12x256xf32>
    %c14 = arith.constant 14 : index
    %c0_130 = arith.constant 0 : index
    %c0_131 = arith.constant 0 : index
    %132 = vector.load %arg5[%c14, %c0_130, %c0_131] : memref<15x12x8xf32, #tpu.memory_space<vmem>>, vector<1x12x8xf32>
    %133 = vector.shape_cast %132 : vector<1x12x8xf32> to vector<12x8xf32>
    %c0_132 = arith.constant 0 : index
    %c135 = arith.constant 135 : index
    %134 = vector.load %arg8[%c0_132, %c135] : memref<8x512xf32, #tpu.memory_space<vmem>>, vector<8x256xf32>
    %cst_133 = arith.constant dense<0.000000e+00> : vector<12x256xf32>
    %135 = tpu.matmul %133, %134, %cst_133 {dimension_numbers = #tpu.dot_dimension_numbers<[1], [0], [0], [1], [0, 0, 1, 1], [], []>} : vector<12x8xf32>, vector<8x256xf32>, vector<12x256xf32> -> vector<12x256xf32>
    %136 = arith.addf %131, %135 : vector<12x256xf32>
    %c0_134 = arith.constant 0 : index
    %c0_135 = arith.constant 0 : index
    %137 = vector.load %arg9[%c0_134, %c0_135] : memref<12x256xf32, #tpu.memory_space<vmem>>, vector<12x256xf32>
    tpu.vector_store %arg9[%c0_134, %c0_135], %136 {strides = array<i32>} : memref<12x256xf32, #tpu.memory_space<vmem>>, vector<12x256xf32>,
    %c0_136 = arith.constant 0 : index
    %c0_137 = arith.constant 0 : index
    %138 = vector.load %arg9[%c0_136, %c0_137] : memref<12x256xf32, #tpu.memory_space<vmem>>, vector<12x256xf32>
    %c0_138 = arith.constant 0 : index
    %c0_139 = arith.constant 0 : index
    %139 = vector.load %arg6[%c0_138, %c0_139] : memref<12x1xf32, #tpu.memory_space<vmem>>, vector<12x1xf32>
    %140 = vector.broadcast %139 : vector<12x1xf32> to vector<12x256xf32>
    %141 = arith.addf %138, %140 : vector<12x256xf32>
    %cst_140 = arith.constant 0.000000e+00 : f32
    %142 = vector.broadcast %cst_140 : f32 to vector<12x256xf32>
    %143 = arith.cmpf oge, %141, %142 : vector<12x256xf32>
    %cst_141 = arith.constant 0.00999999977 : f32
    %144 = vector.broadcast %cst_141 : f32 to vector<12x256xf32>
    %145 = arith.mulf %144, %141 : vector<12x256xf32>
    %146 = arith.select %143, %141, %145 : vector<12x256xi1>, vector<12x256xf32>
    %c0_142 = arith.constant 0 : index
    %c0_143 = arith.constant 0 : index
    %c0_144 = arith.constant 0 : index
    %147 = vector.load %arg7[%c0_142, %c0_143, %c0_144] : memref<1x12x256xf32, #tpu.memory_space<vmem>>, vector<1x12x256xf32>
    %148 = vector.shape_cast %147 : vector<1x12x256xf32> to vector<12x256xf32>
    %149 = vector.shape_cast %146 : vector<12x256xf32> to vector<1x12x256xf32>
    tpu.vector_store %arg7[%c0_142, %c0_143, %c0_144], %149 {strides = array<i32>} : memref<1x12x256xf32, #tpu.memory_space<vmem>>, vector<1x12x256xf32>,
    return
  }
  func.func @transform_0(%arg0: i32, %arg1: i32) -> (i32, i32, i32) {
    %c2_i32 = arith.constant 2 : i32
    %0 = arith.muli %arg1, %c2_i32 : i32
    %c1_i32 = arith.constant 1 : i32
    %1 = arith.subi %0, %c1_i32 : i32
    %c0_i32 = arith.constant 0 : i32
    %2 = arith.maxsi %1, %c0_i32 : i32
    %c0_i32_0 = arith.constant 0 : i32
    %c0_i32_1 = arith.constant 0 : i32
    return %arg0, %c0_i32_0, %2 : i32, i32, i32
  }
  func.func @transform_1(%arg0: i32, %arg1: i32) -> (i32, i32, i32) {
    %c0_i32 = arith.constant 0 : i32
    %c0_i32_0 = arith.constant 0 : i32
    return %arg0, %c0_i32, %arg1 : i32, i32, i32
  }
  func.func @transform_2(%arg0: i32, %arg1: i32) -> (i32, i32, i32) {
    %c1_i32 = arith.constant 1 : i32
    %0 = arith.addi %arg1, %c1_i32 : i32
    %c2_i32 = arith.constant 2 : i32
    %1 = arith.muli %0, %c2_i32 : i32
    %c1_i32_0 = arith.constant 1 : i32
    %2 = arith.minsi %1, %c1_i32_0 : i32
    %c0_i32 = arith.constant 0 : i32
    %c0_i32_1 = arith.constant 0 : i32
    return %arg0, %c0_i32, %2 : i32, i32, i32
  }
  func.func @transform_3(%arg0: i32, %arg1: i32) -> (i32, i32, i32) {
    %c0_i32 = arith.constant 0 : i32
    %c0_i32_0 = arith.constant 0 : i32
    %c0_i32_1 = arith.constant 0 : i32
    %c0_i32_2 = arith.constant 0 : i32
    return %c0_i32, %c0_i32_0, %c0_i32_1 : i32, i32, i32
  }
  func.func @transform_4(%arg0: i32, %arg1: i32) -> (i32, i32) {
    %c0_i32 = arith.constant 0 : i32
    %c0_i32_0 = arith.constant 0 : i32
    %c0_i32_1 = arith.constant 0 : i32
    return %c0_i32, %c0_i32_0 : i32, i32
  }
  func.func @transform_5(%arg0: i32, %arg1: i32) -> (i32, i32, i32) {
    %c0_i32 = arith.constant 0 : i32
    %c0_i32_0 = arith.constant 0 : i32
    return %arg0, %c0_i32, %arg1 : i32, i32, i32
  }
}

module attributes {stable_mosaic.version = 11 : i64} {
  func.func @_conv_leaky_kernel(%arg0: i32, %arg1: i32, %arg2: memref<1x8x128xf32, #tpu.memory_space<vmem>>, %arg3: memref<1x8x256xf32, #tpu.memory_space<vmem>>, %arg4: memref<1x8x128xf32, #tpu.memory_space<vmem>>, %arg5: memref<15x12x8xf32, #tpu.memory_space<vmem>>, %arg6: memref<12x1xf32, #tpu.memory_space<vmem>>, %arg7: memref<1x12x256xf32, #tpu.memory_space<vmem>>, %arg8: memref<8x512xf32, #tpu.memory_space<vmem>>, %arg9: memref<12x256xf32, #tpu.memory_space<vmem>>) attributes {dimension_semantics = [#tpu.dimension_semantics<parallel>, #tpu.dimension_semantics<parallel>], iteration_bounds = array<i64: 2, 1>, scalar_prefetch = 0 : i64, scratch_operands = 2 : i64, tpu.core_type = #tpu.core_type<tc>, window_params = [{transform_indices = @transform_0, window_bounds = array<i64: 1, 8, 128>}, {transform_indices = @transform_1, window_bounds = array<i64: 1, 8, 256>}, {transform_indices = @transform_2, window_bounds = array<i64: 1, 8, 128>}, {pipeline_mode = #tpu.pipeline_mode<synchronous>, transform_indices = @transform_3, window_bounds = array<i64: 15, 12, 8>}, {pipeline_mode = #tpu.pipeline_mode<synchronous>, transform_indices = @transform_4, window_bounds = array<i64: 12, 1>}, {transform_indices = @transform_5, window_bounds = array<i64: 1, 12, 256>}]} {
    %c256_i32 = arith.constant 256 : i32
    %0 = arith.muli %arg1, %c256_i32 : i32
    %c0_i32 = arith.constant 0 : i32
    %1 = arith.cmpi sgt, %arg1, %c0_i32 : i32
    %c0 = arith.constant 0 : index
    %c0_0 = arith.constant 0 : index
    %c0_1 = arith.constant 0 : index
    %2 = vector.load %arg2[%c0, %c0_0, %c0_1] : memref<1x8x128xf32, #tpu.memory_space<vmem>>, vector<1x8x128xf32>
    %3 = vector.shape_cast %2 : vector<1x8x128xf32> to vector<8x128xf32>
    %c0_i32_2 = arith.constant 0 : i32
    %4 = arith.sitofp %c0_i32_2 : i32 to f32
    %5 = vector.broadcast %4 : f32 to vector<8x128xf32>
    %6 = arith.select %1, %3, %5 : vector<8x128xf32>
    %c0_3 = arith.constant 0 : index
    %c0_4 = arith.constant 0 : index
    %7 = vector.load %arg8[%c0_3, %c0_4] : memref<8x512xf32, #tpu.memory_space<vmem>>, vector<8x128xf32>
    tpu.vector_store %arg8[%c0_3, %c0_4], %6 {strides = array<i32>} : memref<8x512xf32, #tpu.memory_space<vmem>>, vector<8x128xf32>,
    %8 = tpu.iota {dimensions = array<i32: 1>} : vector<1x256xi32>
    %9 = vector.broadcast %0 : i32 to vector<1x256xi32>
    %10 = arith.addi %8, %9 : vector<1x256xi32>
    %c200_i32 = arith.constant 200 : i32
    %11 = vector.broadcast %c200_i32 : i32 to vector<1x256xi32>
    %12 = arith.cmpi slt, %10, %11 : vector<1x256xi32>
    %c0_5 = arith.constant 0 : index
    %c0_6 = arith.constant 0 : index
    %c0_7 = arith.constant 0 : index
    %13 = vector.load %arg3[%c0_5, %c0_6, %c0_7] : memref<1x8x256xf32, #tpu.memory_space<vmem>>, vector<1x8x256xf32>
    %14 = vector.shape_cast %13 : vector<1x8x256xf32> to vector<8x256xf32>
    %c0_i32_8 = arith.constant 0 : i32
    %15 = arith.sitofp %c0_i32_8 : i32 to f32
    %16 = vector.shape_cast %12 : vector<1x256xi1> to vector<1x256xi1>
    %17 = vector.broadcast %16 : vector<1x256xi1> to vector<8x256xi1>
    %18 = vector.broadcast %15 : f32 to vector<8x256xf32>
    %19 = arith.select %17, %14, %18 : vector<8x256xi1>, vector<8x256xf32>
    %c0_9 = arith.constant 0 : index
    %c128 = arith.constant 128 : index
    %20 = vector.load %arg8[%c0_9, %c128] : memref<8x512xf32, #tpu.memory_space<vmem>>, vector<8x256xf32>
    tpu.vector_store %arg8[%c0_9, %c128], %19 {strides = array<i32>} : memref<8x512xf32, #tpu.memory_space<vmem>>, vector<8x256xf32>,
    %21 = tpu.iota {dimensions = array<i32: 1>} : vector<1x128xi32>
    %c256_i32_10 = arith.constant 256 : i32
    %22 = arith.addi %0, %c256_i32_10 : i32
    %23 = vector.broadcast %22 : i32 to vector<1x128xi32>
    %24 = arith.addi %21, %23 : vector<1x128xi32>
    %c200_i32_11 = arith.constant 200 : i32
    %25 = vector.broadcast %c200_i32_11 : i32 to vector<1x128xi32>
    %26 = arith.cmpi slt, %24, %25 : vector<1x128xi32>
    %c0_12 = arith.constant 0 : index
    %c0_13 = arith.constant 0 : index
    %c0_14 = arith.constant 0 : index
    %27 = vector.load %arg4[%c0_12, %c0_13, %c0_14] : memref<1x8x128xf32, #tpu.memory_space<vmem>>, vector<1x8x128xf32>
    %28 = vector.shape_cast %27 : vector<1x8x128xf32> to vector<8x128xf32>
    %c0_i32_15 = arith.constant 0 : i32
    %29 = arith.sitofp %c0_i32_15 : i32 to f32
    %30 = vector.shape_cast %26 : vector<1x128xi1> to vector<1x128xi1>
    %31 = vector.broadcast %30 : vector<1x128xi1> to vector<8x128xi1>
    %32 = vector.broadcast %29 : f32 to vector<8x128xf32>
    %33 = arith.select %31, %28, %32 : vector<8x128xi1>, vector<8x128xf32>
    %c0_16 = arith.constant 0 : index
    %c384 = arith.constant 384 : index
    %34 = vector.load %arg8[%c0_16, %c384] : memref<8x512xf32, #tpu.memory_space<vmem>>, vector<8x128xf32>
    tpu.vector_store %arg8[%c0_16, %c384], %33 {strides = array<i32>} : memref<8x512xf32, #tpu.memory_space<vmem>>, vector<8x128xf32>,
    %c0_17 = arith.constant 0 : index
    %c0_18 = arith.constant 0 : index
    %c0_19 = arith.constant 0 : index
    %35 = vector.load %arg5[%c0_17, %c0_18, %c0_19] : memref<15x12x8xf32, #tpu.memory_space<vmem>>, vector<1x12x8xf32>
    %36 = vector.shape_cast %35 : vector<1x12x8xf32> to vector<12x8xf32>
    %c0_20 = arith.constant 0 : index
    %c121 = arith.constant 121 : index
    %37 = vector.load %arg8[%c0_20, %c121] : memref<8x512xf32, #tpu.memory_space<vmem>>, vector<8x256xf32>
    %cst = arith.constant dense<0.000000e+00> : vector<12x256xf32>
    %38 = tpu.matmul %36, %37, %cst {dimension_numbers = #tpu.dot_dimension_numbers<[1], [0], [0], [1], [0, 0, 1, 1], [], []>} : vector<12x8xf32>, vector<8x256xf32>, vector<12x256xf32> -> vector<12x256xf32>
    %c0_21 = arith.constant 0 : index
    %c0_22 = arith.constant 0 : index
    %39 = vector.load %arg9[%c0_21, %c0_22] : memref<12x256xf32, #tpu.memory_space<vmem>>, vector<12x256xf32>
    tpu.vector_store %arg9[%c0_21, %c0_22], %38 {strides = array<i32>} : memref<12x256xf32, #tpu.memory_space<vmem>>, vector<12x256xf32>,
    %c0_23 = arith.constant 0 : index
    %c0_24 = arith.constant 0 : index
    %40 = vector.load %arg9[%c0_23, %c0_24] : memref<12x256xf32, #tpu.memory_space<vmem>>, vector<12x256xf32>
    %c1 = arith.constant 1 : index
    %c0_25 = arith.constant 0 : index
    %c0_26 = arith.constant 0 : index
    %41 = vector.load %arg5[%c1, %c0_25, %c0_26] : memref<15x12x8xf32, #tpu.memory_space<vmem>>, vector<1x12x8xf32>
    %42 = vector.shape_cast %41 : vector<1x12x8xf32> to vector<12x8xf32>
    %c0_27 = arith.constant 0 : index
    %c122 = arith.constant 122 : index
    %43 = vector.load %arg8[%c0_27, %c122] : memref<8x512xf32, #tpu.memory_space<vmem>>, vector<8x256xf32>
    %cst_28 = arith.constant dense<0.000000e+00> : vector<12x256xf32>
    %44 = tpu.matmul %42, %43, %cst_28 {dimension_numbers = #tpu.dot_dimension_numbers<[1], [0], [0], [1], [0, 0, 1, 1], [], []>} : vector<12x8xf32>, vector<8x256xf32>, vector<12x256xf32> -> vector<12x256xf32>
    %45 = arith.addf %40, %44 : vector<12x256xf32>
    %c0_29 = arith.constant 0 : index
    %c0_30 = arith.constant 0 : index
    %46 = vector.load %arg9[%c0_29, %c0_30] : memref<12x256xf32, #tpu.memory_space<vmem>>, vector<12x256xf32>
    tpu.vector_store %arg9[%c0_29, %c0_30], %45 {strides = array<i32>} : memref<12x256xf32, #tpu.memory_space<vmem>>, vector<12x256xf32>,
    %c0_31 = arith.constant 0 : index
    %c0_32 = arith.constant 0 : index
    %47 = vector.load %arg9[%c0_31, %c0_32] : memref<12x256xf32, #tpu.memory_space<vmem>>, vector<12x256xf32>
    %c2 = arith.constant 2 : index
    %c0_33 = arith.constant 0 : index
    %c0_34 = arith.constant 0 : index
    %48 = vector.load %arg5[%c2, %c0_33, %c0_34] : memref<15x12x8xf32, #tpu.memory_space<vmem>>, vector<1x12x8xf32>
    %49 = vector.shape_cast %48 : vector<1x12x8xf32> to vector<12x8xf32>
    %c0_35 = arith.constant 0 : index
    %c123 = arith.constant 123 : index
    %50 = vector.load %arg8[%c0_35, %c123] : memref<8x512xf32, #tpu.memory_space<vmem>>, vector<8x256xf32>
    %cst_36 = arith.constant dense<0.000000e+00> : vector<12x256xf32>
    %51 = tpu.matmul %49, %50, %cst_36 {dimension_numbers = #tpu.dot_dimension_numbers<[1], [0], [0], [1], [0, 0, 1, 1], [], []>} : vector<12x8xf32>, vector<8x256xf32>, vector<12x256xf32> -> vector<12x256xf32>
    %52 = arith.addf %47, %51 : vector<12x256xf32>
    %c0_37 = arith.constant 0 : index
    %c0_38 = arith.constant 0 : index
    %53 = vector.load %arg9[%c0_37, %c0_38] : memref<12x256xf32, #tpu.memory_space<vmem>>, vector<12x256xf32>
    tpu.vector_store %arg9[%c0_37, %c0_38], %52 {strides = array<i32>} : memref<12x256xf32, #tpu.memory_space<vmem>>, vector<12x256xf32>,
    %c0_39 = arith.constant 0 : index
    %c0_40 = arith.constant 0 : index
    %54 = vector.load %arg9[%c0_39, %c0_40] : memref<12x256xf32, #tpu.memory_space<vmem>>, vector<12x256xf32>
    %c3 = arith.constant 3 : index
    %c0_41 = arith.constant 0 : index
    %c0_42 = arith.constant 0 : index
    %55 = vector.load %arg5[%c3, %c0_41, %c0_42] : memref<15x12x8xf32, #tpu.memory_space<vmem>>, vector<1x12x8xf32>
    %56 = vector.shape_cast %55 : vector<1x12x8xf32> to vector<12x8xf32>
    %c0_43 = arith.constant 0 : index
    %c124 = arith.constant 124 : index
    %57 = vector.load %arg8[%c0_43, %c124] : memref<8x512xf32, #tpu.memory_space<vmem>>, vector<8x256xf32>
    %cst_44 = arith.constant dense<0.000000e+00> : vector<12x256xf32>
    %58 = tpu.matmul %56, %57, %cst_44 {dimension_numbers = #tpu.dot_dimension_numbers<[1], [0], [0], [1], [0, 0, 1, 1], [], []>} : vector<12x8xf32>, vector<8x256xf32>, vector<12x256xf32> -> vector<12x256xf32>
    %59 = arith.addf %54, %58 : vector<12x256xf32>
    %c0_45 = arith.constant 0 : index
    %c0_46 = arith.constant 0 : index
    %60 = vector.load %arg9[%c0_45, %c0_46] : memref<12x256xf32, #tpu.memory_space<vmem>>, vector<12x256xf32>
    tpu.vector_store %arg9[%c0_45, %c0_46], %59 {strides = array<i32>} : memref<12x256xf32, #tpu.memory_space<vmem>>, vector<12x256xf32>,
    %c0_47 = arith.constant 0 : index
    %c0_48 = arith.constant 0 : index
    %61 = vector.load %arg9[%c0_47, %c0_48] : memref<12x256xf32, #tpu.memory_space<vmem>>, vector<12x256xf32>
    %c4 = arith.constant 4 : index
    %c0_49 = arith.constant 0 : index
    %c0_50 = arith.constant 0 : index
    %62 = vector.load %arg5[%c4, %c0_49, %c0_50] : memref<15x12x8xf32, #tpu.memory_space<vmem>>, vector<1x12x8xf32>
    %63 = vector.shape_cast %62 : vector<1x12x8xf32> to vector<12x8xf32>
    %c0_51 = arith.constant 0 : index
    %c125 = arith.constant 125 : index
    %64 = vector.load %arg8[%c0_51, %c125] : memref<8x512xf32, #tpu.memory_space<vmem>>, vector<8x256xf32>
    %cst_52 = arith.constant dense<0.000000e+00> : vector<12x256xf32>
    %65 = tpu.matmul %63, %64, %cst_52 {dimension_numbers = #tpu.dot_dimension_numbers<[1], [0], [0], [1], [0, 0, 1, 1], [], []>} : vector<12x8xf32>, vector<8x256xf32>, vector<12x256xf32> -> vector<12x256xf32>
    %66 = arith.addf %61, %65 : vector<12x256xf32>
    %c0_53 = arith.constant 0 : index
    %c0_54 = arith.constant 0 : index
    %67 = vector.load %arg9[%c0_53, %c0_54] : memref<12x256xf32, #tpu.memory_space<vmem>>, vector<12x256xf32>
    tpu.vector_store %arg9[%c0_53, %c0_54], %66 {strides = array<i32>} : memref<12x256xf32, #tpu.memory_space<vmem>>, vector<12x256xf32>,
    %c0_55 = arith.constant 0 : index
    %c0_56 = arith.constant 0 : index
    %68 = vector.load %arg9[%c0_55, %c0_56] : memref<12x256xf32, #tpu.memory_space<vmem>>, vector<12x256xf32>
    %c5 = arith.constant 5 : index
    %c0_57 = arith.constant 0 : index
    %c0_58 = arith.constant 0 : index
    %69 = vector.load %arg5[%c5, %c0_57, %c0_58] : memref<15x12x8xf32, #tpu.memory_space<vmem>>, vector<1x12x8xf32>
    %70 = vector.shape_cast %69 : vector<1x12x8xf32> to vector<12x8xf32>
    %c0_59 = arith.constant 0 : index
    %c126 = arith.constant 126 : index
    %71 = vector.load %arg8[%c0_59, %c126] : memref<8x512xf32, #tpu.memory_space<vmem>>, vector<8x256xf32>
    %cst_60 = arith.constant dense<0.000000e+00> : vector<12x256xf32>
    %72 = tpu.matmul %70, %71, %cst_60 {dimension_numbers = #tpu.dot_dimension_numbers<[1], [0], [0], [1], [0, 0, 1, 1], [], []>} : vector<12x8xf32>, vector<8x256xf32>, vector<12x256xf32> -> vector<12x256xf32>
    %73 = arith.addf %68, %72 : vector<12x256xf32>
    %c0_61 = arith.constant 0 : index
    %c0_62 = arith.constant 0 : index
    %74 = vector.load %arg9[%c0_61, %c0_62] : memref<12x256xf32, #tpu.memory_space<vmem>>, vector<12x256xf32>
    tpu.vector_store %arg9[%c0_61, %c0_62], %73 {strides = array<i32>} : memref<12x256xf32, #tpu.memory_space<vmem>>, vector<12x256xf32>,
    %c0_63 = arith.constant 0 : index
    %c0_64 = arith.constant 0 : index
    %75 = vector.load %arg9[%c0_63, %c0_64] : memref<12x256xf32, #tpu.memory_space<vmem>>, vector<12x256xf32>
    %c6 = arith.constant 6 : index
    %c0_65 = arith.constant 0 : index
    %c0_66 = arith.constant 0 : index
    %76 = vector.load %arg5[%c6, %c0_65, %c0_66] : memref<15x12x8xf32, #tpu.memory_space<vmem>>, vector<1x12x8xf32>
    %77 = vector.shape_cast %76 : vector<1x12x8xf32> to vector<12x8xf32>
    %c0_67 = arith.constant 0 : index
    %c127 = arith.constant 127 : index
    %78 = vector.load %arg8[%c0_67, %c127] : memref<8x512xf32, #tpu.memory_space<vmem>>, vector<8x256xf32>
    %cst_68 = arith.constant dense<0.000000e+00> : vector<12x256xf32>
    %79 = tpu.matmul %77, %78, %cst_68 {dimension_numbers = #tpu.dot_dimension_numbers<[1], [0], [0], [1], [0, 0, 1, 1], [], []>} : vector<12x8xf32>, vector<8x256xf32>, vector<12x256xf32> -> vector<12x256xf32>
    %80 = arith.addf %75, %79 : vector<12x256xf32>
    %c0_69 = arith.constant 0 : index
    %c0_70 = arith.constant 0 : index
    %81 = vector.load %arg9[%c0_69, %c0_70] : memref<12x256xf32, #tpu.memory_space<vmem>>, vector<12x256xf32>
    tpu.vector_store %arg9[%c0_69, %c0_70], %80 {strides = array<i32>} : memref<12x256xf32, #tpu.memory_space<vmem>>, vector<12x256xf32>,
    %c0_71 = arith.constant 0 : index
    %c0_72 = arith.constant 0 : index
    %82 = vector.load %arg9[%c0_71, %c0_72] : memref<12x256xf32, #tpu.memory_space<vmem>>, vector<12x256xf32>
    %c7 = arith.constant 7 : index
    %c0_73 = arith.constant 0 : index
    %c0_74 = arith.constant 0 : index
    %83 = vector.load %arg5[%c7, %c0_73, %c0_74] : memref<15x12x8xf32, #tpu.memory_space<vmem>>, vector<1x12x8xf32>
    %84 = vector.shape_cast %83 : vector<1x12x8xf32> to vector<12x8xf32>
    %c0_75 = arith.constant 0 : index
    %c128_76 = arith.constant 128 : index
    %85 = vector.load %arg8[%c0_75, %c128_76] : memref<8x512xf32, #tpu.memory_space<vmem>>, vector<8x256xf32>
    %cst_77 = arith.constant dense<0.000000e+00> : vector<12x256xf32>
    %86 = tpu.matmul %84, %85, %cst_77 {dimension_numbers = #tpu.dot_dimension_numbers<[1], [0], [0], [1], [0, 0, 1, 1], [], []>} : vector<12x8xf32>, vector<8x256xf32>, vector<12x256xf32> -> vector<12x256xf32>
    %87 = arith.addf %82, %86 : vector<12x256xf32>
    %c0_78 = arith.constant 0 : index
    %c0_79 = arith.constant 0 : index
    %88 = vector.load %arg9[%c0_78, %c0_79] : memref<12x256xf32, #tpu.memory_space<vmem>>, vector<12x256xf32>
    tpu.vector_store %arg9[%c0_78, %c0_79], %87 {strides = array<i32>} : memref<12x256xf32, #tpu.memory_space<vmem>>, vector<12x256xf32>,
    %c0_80 = arith.constant 0 : index
    %c0_81 = arith.constant 0 : index
    %89 = vector.load %arg9[%c0_80, %c0_81] : memref<12x256xf32, #tpu.memory_space<vmem>>, vector<12x256xf32>
    %c8 = arith.constant 8 : index
    %c0_82 = arith.constant 0 : index
    %c0_83 = arith.constant 0 : index
    %90 = vector.load %arg5[%c8, %c0_82, %c0_83] : memref<15x12x8xf32, #tpu.memory_space<vmem>>, vector<1x12x8xf32>
    %91 = vector.shape_cast %90 : vector<1x12x8xf32> to vector<12x8xf32>
    %c0_84 = arith.constant 0 : index
    %c129 = arith.constant 129 : index
    %92 = vector.load %arg8[%c0_84, %c129] : memref<8x512xf32, #tpu.memory_space<vmem>>, vector<8x256xf32>
    %cst_85 = arith.constant dense<0.000000e+00> : vector<12x256xf32>
    %93 = tpu.matmul %91, %92, %cst_85 {dimension_numbers = #tpu.dot_dimension_numbers<[1], [0], [0], [1], [0, 0, 1, 1], [], []>} : vector<12x8xf32>, vector<8x256xf32>, vector<12x256xf32> -> vector<12x256xf32>
    %94 = arith.addf %89, %93 : vector<12x256xf32>
    %c0_86 = arith.constant 0 : index
    %c0_87 = arith.constant 0 : index
    %95 = vector.load %arg9[%c0_86, %c0_87] : memref<12x256xf32, #tpu.memory_space<vmem>>, vector<12x256xf32>
    tpu.vector_store %arg9[%c0_86, %c0_87], %94 {strides = array<i32>} : memref<12x256xf32, #tpu.memory_space<vmem>>, vector<12x256xf32>,
    %c0_88 = arith.constant 0 : index
    %c0_89 = arith.constant 0 : index
    %96 = vector.load %arg9[%c0_88, %c0_89] : memref<12x256xf32, #tpu.memory_space<vmem>>, vector<12x256xf32>
    %c9 = arith.constant 9 : index
    %c0_90 = arith.constant 0 : index
    %c0_91 = arith.constant 0 : index
    %97 = vector.load %arg5[%c9, %c0_90, %c0_91] : memref<15x12x8xf32, #tpu.memory_space<vmem>>, vector<1x12x8xf32>
    %98 = vector.shape_cast %97 : vector<1x12x8xf32> to vector<12x8xf32>
    %c0_92 = arith.constant 0 : index
    %c130 = arith.constant 130 : index
    %99 = vector.load %arg8[%c0_92, %c130] : memref<8x512xf32, #tpu.memory_space<vmem>>, vector<8x256xf32>
    %cst_93 = arith.constant dense<0.000000e+00> : vector<12x256xf32>
    %100 = tpu.matmul %98, %99, %cst_93 {dimension_numbers = #tpu.dot_dimension_numbers<[1], [0], [0], [1], [0, 0, 1, 1], [], []>} : vector<12x8xf32>, vector<8x256xf32>, vector<12x256xf32> -> vector<12x256xf32>
    %101 = arith.addf %96, %100 : vector<12x256xf32>
    %c0_94 = arith.constant 0 : index
    %c0_95 = arith.constant 0 : index
    %102 = vector.load %arg9[%c0_94, %c0_95] : memref<12x256xf32, #tpu.memory_space<vmem>>, vector<12x256xf32>
    tpu.vector_store %arg9[%c0_94, %c0_95], %101 {strides = array<i32>} : memref<12x256xf32, #tpu.memory_space<vmem>>, vector<12x256xf32>,
    %c0_96 = arith.constant 0 : index
    %c0_97 = arith.constant 0 : index
    %103 = vector.load %arg9[%c0_96, %c0_97] : memref<12x256xf32, #tpu.memory_space<vmem>>, vector<12x256xf32>
    %c10 = arith.constant 10 : index
    %c0_98 = arith.constant 0 : index
    %c0_99 = arith.constant 0 : index
    %104 = vector.load %arg5[%c10, %c0_98, %c0_99] : memref<15x12x8xf32, #tpu.memory_space<vmem>>, vector<1x12x8xf32>
    %105 = vector.shape_cast %104 : vector<1x12x8xf32> to vector<12x8xf32>
    %c0_100 = arith.constant 0 : index
    %c131 = arith.constant 131 : index
    %106 = vector.load %arg8[%c0_100, %c131] : memref<8x512xf32, #tpu.memory_space<vmem>>, vector<8x256xf32>
    %cst_101 = arith.constant dense<0.000000e+00> : vector<12x256xf32>
    %107 = tpu.matmul %105, %106, %cst_101 {dimension_numbers = #tpu.dot_dimension_numbers<[1], [0], [0], [1], [0, 0, 1, 1], [], []>} : vector<12x8xf32>, vector<8x256xf32>, vector<12x256xf32> -> vector<12x256xf32>
    %108 = arith.addf %103, %107 : vector<12x256xf32>
    %c0_102 = arith.constant 0 : index
    %c0_103 = arith.constant 0 : index
    %109 = vector.load %arg9[%c0_102, %c0_103] : memref<12x256xf32, #tpu.memory_space<vmem>>, vector<12x256xf32>
    tpu.vector_store %arg9[%c0_102, %c0_103], %108 {strides = array<i32>} : memref<12x256xf32, #tpu.memory_space<vmem>>, vector<12x256xf32>,
    %c0_104 = arith.constant 0 : index
    %c0_105 = arith.constant 0 : index
    %110 = vector.load %arg9[%c0_104, %c0_105] : memref<12x256xf32, #tpu.memory_space<vmem>>, vector<12x256xf32>
    %c11 = arith.constant 11 : index
    %c0_106 = arith.constant 0 : index
    %c0_107 = arith.constant 0 : index
    %111 = vector.load %arg5[%c11, %c0_106, %c0_107] : memref<15x12x8xf32, #tpu.memory_space<vmem>>, vector<1x12x8xf32>
    %112 = vector.shape_cast %111 : vector<1x12x8xf32> to vector<12x8xf32>
    %c0_108 = arith.constant 0 : index
    %c132 = arith.constant 132 : index
    %113 = vector.load %arg8[%c0_108, %c132] : memref<8x512xf32, #tpu.memory_space<vmem>>, vector<8x256xf32>
    %cst_109 = arith.constant dense<0.000000e+00> : vector<12x256xf32>
    %114 = tpu.matmul %112, %113, %cst_109 {dimension_numbers = #tpu.dot_dimension_numbers<[1], [0], [0], [1], [0, 0, 1, 1], [], []>} : vector<12x8xf32>, vector<8x256xf32>, vector<12x256xf32> -> vector<12x256xf32>
    %115 = arith.addf %110, %114 : vector<12x256xf32>
    %c0_110 = arith.constant 0 : index
    %c0_111 = arith.constant 0 : index
    %116 = vector.load %arg9[%c0_110, %c0_111] : memref<12x256xf32, #tpu.memory_space<vmem>>, vector<12x256xf32>
    tpu.vector_store %arg9[%c0_110, %c0_111], %115 {strides = array<i32>} : memref<12x256xf32, #tpu.memory_space<vmem>>, vector<12x256xf32>,
    %c0_112 = arith.constant 0 : index
    %c0_113 = arith.constant 0 : index
    %117 = vector.load %arg9[%c0_112, %c0_113] : memref<12x256xf32, #tpu.memory_space<vmem>>, vector<12x256xf32>
    %c12 = arith.constant 12 : index
    %c0_114 = arith.constant 0 : index
    %c0_115 = arith.constant 0 : index
    %118 = vector.load %arg5[%c12, %c0_114, %c0_115] : memref<15x12x8xf32, #tpu.memory_space<vmem>>, vector<1x12x8xf32>
    %119 = vector.shape_cast %118 : vector<1x12x8xf32> to vector<12x8xf32>
    %c0_116 = arith.constant 0 : index
    %c133 = arith.constant 133 : index
    %120 = vector.load %arg8[%c0_116, %c133] : memref<8x512xf32, #tpu.memory_space<vmem>>, vector<8x256xf32>
    %cst_117 = arith.constant dense<0.000000e+00> : vector<12x256xf32>
    %121 = tpu.matmul %119, %120, %cst_117 {dimension_numbers = #tpu.dot_dimension_numbers<[1], [0], [0], [1], [0, 0, 1, 1], [], []>} : vector<12x8xf32>, vector<8x256xf32>, vector<12x256xf32> -> vector<12x256xf32>
    %122 = arith.addf %117, %121 : vector<12x256xf32>
    %c0_118 = arith.constant 0 : index
    %c0_119 = arith.constant 0 : index
    %123 = vector.load %arg9[%c0_118, %c0_119] : memref<12x256xf32, #tpu.memory_space<vmem>>, vector<12x256xf32>
    tpu.vector_store %arg9[%c0_118, %c0_119], %122 {strides = array<i32>} : memref<12x256xf32, #tpu.memory_space<vmem>>, vector<12x256xf32>,
    %c0_120 = arith.constant 0 : index
    %c0_121 = arith.constant 0 : index
    %124 = vector.load %arg9[%c0_120, %c0_121] : memref<12x256xf32, #tpu.memory_space<vmem>>, vector<12x256xf32>
    %c13 = arith.constant 13 : index
    %c0_122 = arith.constant 0 : index
    %c0_123 = arith.constant 0 : index
    %125 = vector.load %arg5[%c13, %c0_122, %c0_123] : memref<15x12x8xf32, #tpu.memory_space<vmem>>, vector<1x12x8xf32>
    %126 = vector.shape_cast %125 : vector<1x12x8xf32> to vector<12x8xf32>
    %c0_124 = arith.constant 0 : index
    %c134 = arith.constant 134 : index
    %127 = vector.load %arg8[%c0_124, %c134] : memref<8x512xf32, #tpu.memory_space<vmem>>, vector<8x256xf32>
    %cst_125 = arith.constant dense<0.000000e+00> : vector<12x256xf32>
    %128 = tpu.matmul %126, %127, %cst_125 {dimension_numbers = #tpu.dot_dimension_numbers<[1], [0], [0], [1], [0, 0, 1, 1], [], []>} : vector<12x8xf32>, vector<8x256xf32>, vector<12x256xf32> -> vector<12x256xf32>
    %129 = arith.addf %124, %128 : vector<12x256xf32>
    %c0_126 = arith.constant 0 : index
    %c0_127 = arith.constant 0 : index
    %130 = vector.load %arg9[%c0_126, %c0_127] : memref<12x256xf32, #tpu.memory_space<vmem>>, vector<12x256xf32>
    tpu.vector_store %arg9[%c0_126, %c0_127], %129 {strides = array<i32>} : memref<12x256xf32, #tpu.memory_space<vmem>>, vector<12x256xf32>,
    %c0_128 = arith.constant 0 : index
    %c0_129 = arith.constant 0 : index
    %131 = vector.load %arg9[%c0_128, %c0_129] : memref<12x256xf32, #tpu.memory_space<vmem>>, vector<12x256xf32>
    %c14 = arith.constant 14 : index
    %c0_130 = arith.constant 0 : index
    %c0_131 = arith.constant 0 : index
    %132 = vector.load %arg5[%c14, %c0_130, %c0_131] : memref<15x12x8xf32, #tpu.memory_space<vmem>>, vector<1x12x8xf32>
    %133 = vector.shape_cast %132 : vector<1x12x8xf32> to vector<12x8xf32>
    %c0_132 = arith.constant 0 : index
    %c135 = arith.constant 135 : index
    %134 = vector.load %arg8[%c0_132, %c135] : memref<8x512xf32, #tpu.memory_space<vmem>>, vector<8x256xf32>
    %cst_133 = arith.constant dense<0.000000e+00> : vector<12x256xf32>
    %135 = tpu.matmul %133, %134, %cst_133 {dimension_numbers = #tpu.dot_dimension_numbers<[1], [0], [0], [1], [0, 0, 1, 1], [], []>} : vector<12x8xf32>, vector<8x256xf32>, vector<12x256xf32> -> vector<12x256xf32>
    %136 = arith.addf %131, %135 : vector<12x256xf32>
    %c0_134 = arith.constant 0 : index
    %c0_135 = arith.constant 0 : index
    %137 = vector.load %arg9[%c0_134, %c0_135] : memref<12x256xf32, #tpu.memory_space<vmem>>, vector<12x256xf32>
    tpu.vector_store %arg9[%c0_134, %c0_135], %136 {strides = array<i32>} : memref<12x256xf32, #tpu.memory_space<vmem>>, vector<12x256xf32>,
    %c0_136 = arith.constant 0 : index
    %c0_137 = arith.constant 0 : index
    %138 = vector.load %arg9[%c0_136, %c0_137] : memref<12x256xf32, #tpu.memory_space<vmem>>, vector<12x256xf32>
    %c0_138 = arith.constant 0 : index
    %c0_139 = arith.constant 0 : index
    %139 = vector.load %arg6[%c0_138, %c0_139] : memref<12x1xf32, #tpu.memory_space<vmem>>, vector<12x1xf32>
    %140 = vector.broadcast %139 : vector<12x1xf32> to vector<12x256xf32>
    %141 = arith.addf %138, %140 : vector<12x256xf32>
    %cst_140 = arith.constant 0.000000e+00 : f32
    %142 = vector.broadcast %cst_140 : f32 to vector<12x256xf32>
    %143 = arith.cmpf oge, %141, %142 : vector<12x256xf32>
    %cst_141 = arith.constant 0.00999999977 : f32
    %144 = vector.broadcast %cst_141 : f32 to vector<12x256xf32>
    %145 = arith.mulf %144, %141 : vector<12x256xf32>
    %146 = arith.select %143, %141, %145 : vector<12x256xi1>, vector<12x256xf32>
    %c0_142 = arith.constant 0 : index
    %c0_143 = arith.constant 0 : index
    %c0_144 = arith.constant 0 : index
    %147 = vector.load %arg7[%c0_142, %c0_143, %c0_144] : memref<1x12x256xf32, #tpu.memory_space<vmem>>, vector<1x12x256xf32>
    %148 = vector.shape_cast %147 : vector<1x12x256xf32> to vector<12x256xf32>
    %149 = vector.shape_cast %146 : vector<12x256xf32> to vector<1x12x256xf32>
    tpu.vector_store %arg7[%c0_142, %c0_143, %c0_144], %149 {strides = array<i32>} : memref<1x12x256xf32, #tpu.memory_space<vmem>>, vector<1x12x256xf32>,
    return
  }
  func.func @transform_0(%arg0: i32, %arg1: i32) -> (i32, i32, i32) {
    %c2_i32 = arith.constant 2 : i32
    %0 = arith.muli %arg1, %c2_i32 : i32
    %c1_i32 = arith.constant 1 : i32
    %1 = arith.subi %0, %c1_i32 : i32
    %c0_i32 = arith.constant 0 : i32
    %2 = arith.maxsi %1, %c0_i32 : i32
    %c0_i32_0 = arith.constant 0 : i32
    %c0_i32_1 = arith.constant 0 : i32
    return %arg0, %c0_i32_0, %2 : i32, i32, i32
  }
  func.func @transform_1(%arg0: i32, %arg1: i32) -> (i32, i32, i32) {
    %c0_i32 = arith.constant 0 : i32
    %c0_i32_0 = arith.constant 0 : i32
    return %arg0, %c0_i32, %arg1 : i32, i32, i32
  }
  func.func @transform_2(%arg0: i32, %arg1: i32) -> (i32, i32, i32) {
    %c1_i32 = arith.constant 1 : i32
    %0 = arith.addi %arg1, %c1_i32 : i32
    %c2_i32 = arith.constant 2 : i32
    %1 = arith.muli %0, %c2_i32 : i32
    %c1_i32_0 = arith.constant 1 : i32
    %2 = arith.minsi %1, %c1_i32_0 : i32
    %c0_i32 = arith.constant 0 : i32
    %c0_i32_1 = arith.constant 0 : i32
    return %arg0, %c0_i32, %2 : i32, i32, i32
  }
  func.func @transform_3(%arg0: i32, %arg1: i32) -> (i32, i32, i32) {
    %c0_i32 = arith.constant 0 : i32
    %c0_i32_0 = arith.constant 0 : i32
    %c0_i32_1 = arith.constant 0 : i32
    %c0_i32_2 = arith.constant 0 : i32
    return %c0_i32, %c0_i32_0, %c0_i32_1 : i32, i32, i32
  }
  func.func @transform_4(%arg0: i32, %arg1: i32) -> (i32, i32) {
    %c0_i32 = arith.constant 0 : i32
    %c0_i32_0 = arith.constant 0 : i32
    %c0_i32_1 = arith.constant 0 : i32
    return %c0_i32, %c0_i32_0 : i32, i32
  }
  func.func @transform_5(%arg0: i32, %arg1: i32) -> (i32, i32, i32) {
    %c0_i32 = arith.constant 0 : i32
    %c0_i32_0 = arith.constant 0 : i32
    return %arg0, %c0_i32, %arg1 : i32, i32, i32
  }
}

</mosaic_0001>

<bundles_post_ra>
// kernel: tpu_custom_call.1
= control target key start
LH: loop header
LB: loop body
LE: loop exit
PB: predicated region body
PF: predicated region fallthrough
CT: control target
= control target key end

     0   :  { %s2471_s18 = smov 0   ;;  %s2473_s19 = smov 0   ;;  %s2739_s0 = inlined_call_operand.vmem [shape: f32[2,8,200], index: 0, kind: input, shape index: {}]   ;;  %s2740_s1 = inlined_call_operand.vmem [shape: f32[2,8,200], index: 1, kind: input, shape index: {}]   ;;  %s2741_s2 = inlined_call_operand.vmem [shape: f32[2,8,200], index: 2, kind: input, shape index: {}]   ;;  %s2742_s3 = inlined_call_operand.vmem [shape: f32[15,12,8], index: 3, kind: input, shape index: {}]   ;;  %s2743_s4 = inlined_call_operand.vmem [shape: f32[12,1], index: 4, kind: input, shape index: {}]   ;;  %s2744_s5 = inlined_call_operand.vmem [shape: f32[2,12,200], index: 5, kind: output, shape index: {}]  }
   0x1   :  { %s2475_s0 = smov 0  }
   0x2 LB: > { %s27_s2 = sadd.s32 1, %s2419_s19  ;;  %p2282_p0 = scmp.ge.s32.totalorder %s2423_s0, 1  ;;  %s2423_s0 = sphi %s2475_s0, %s15_s0   ;;  %s2419_s19 = sphi %s2473_s19, %s2746_s19   ;;  %s2415_s18 = sphi %s2471_s18, %s2745_s18  }
   0x3   : > { %p29_p1 = scmp.ge.s32.totalorder %s27_s2, 2  ;;  %p270_p2 = scmp.lt.s32.totalorder %s2423_s0, 3 }
   0x5   : > { %s2748_s2 = smov (%p29_p1, %s27_s2), 0  ;;  %p271_p3 = pnand %p2282_p0, %p270_p2 }
   0x6   : > { %p347_p4 = scmp.lt.s32.totalorder (!%p271_p3), %s2415_s18, 1  ;;  %s2426_s20 = smov (!%p271_p3), 7  }
   0x7   : > { %274 = sbr.rel (%p271_p3) target bundleno = 487 (0x1e7), region = 40  ;;  %s2427_s25 = smov (!%p271_p3), 6  }
   0x8   : > { %s2428_s26 = smov (!%p271_p3), 5   ;;  %s2429_s27 = smov (!%p271_p3), 4  }
   0x9   : > { %s2430_s28 = smov (!%p271_p3), 3   ;;  %s2431_s29 = smov (!%p271_p3), 2  }
   0xa   : > { %s2432_s30 = smov (!%p271_p3), 1   ;;  %s2433_s6 = smov (!%p271_p3), 127  }
   0xb   : > { %s2434_s7 = smov (!%p271_p3), 126   ;;  %s2435_s8 = smov (!%p271_p3), 125  }
   0xc   : > { %v390_v0 = vlaneseq  ;;  %v2425_v1 = vmov 0.0   ;;  %s2750_s18 = smov (!%p347_p4, %s2415_s18), 1  ;;  %s2436_s9 = smov 124   ;;  %vm431_vm1 = vcmask 56320   ;;  %v417_v13 = vld [vmem:[%s2742_s3] sm:$0xff]  ;;  %vm436_vm2 = vcmask 64512  }
   0xd   : > { %425 = vrot.lane.b32.xlu1 %v2425_v1, %s2426_s20  ;;  %507 = vmatprep.mubr.f32.mxu0 %v2425_v1  ;;  %s2352_s21 = sshll.u32 %s2750_s18, 4  ;;  %s2437_s10 = smov 123   ;;  %v418_v14 = vld [vmem:[%s2742_s3 + $0x8] sm:$0xf]  ;;  %vm543_vm3 = vcmask 48128   ;;  %v2293_v19 = vld [vmem:[%s2742_s3 + $0x10] sm:$0xff] }
   0xe   : > { %v391_v2 = vand.u32 127, %v390_v0  ;;  %513 = vmatprep.mubr.f32.mxu1 %v2425_v1  ;;  %s354_s24 = scalar_lea.vmem %s2740_s1, %s2352_s21  ;;  %s2438_s11 = smov 122   ;;  %vm658_vm4 = vcmask 39936   ;;  %v2294_v23 = vld [vmem:[%s2742_s3 + $0x18] sm:$0xf]  ;;  %v2297_v27 = vld [vmem:[%s2742_s3 + $0x20] sm:$0xff] }
   0xf   : > { %v2500_v4 = vld [vmem:[%s354_s24] sm:$0xff]  ;;  %v2503_v5 = vld [vmem:[%s354_s24 + $0x8] sm:$0xff]  ;;  %s2439_s12 = smov 121   ;;  %vm773_vm5 = vcmask 31744   ;;  %v2301_v34 = vld [vmem:[%s2742_s3 + $0x30] sm:$0xff]  ;;  %vm888_vm6 = vcmask 23552  }
  0x10   : > { %v2495_v3 = vadd.s32 128, %v391_v2  ;;  %427 = vrot.lane.b32.xlu0 %v2500_v4, %s2426_s20  ;;  %v2298_v31 = vld [vmem:[%s2742_s3 + $0x28] sm:$0xf]  ;;  %v2302_v38 = vld [vmem:[%s2742_s3 + $0x38] sm:$0xf]  ;;  %v2440_v39 = vmov 0  }
  0x11   : > { %539 = vrot.lane.b32.xlu1 %v2500_v4, %s2427_s25  ;;  %2399 = vset.pattern.permute.xlu0 %v2440_v39  ;;  %v2123_v40 = vld [vmem:[%s2743_s4] sm:$0xff]  ;;  %vm1003_vm7 = vcmask 15360   ;;  %v2306_v47 = vld [vmem:[%s2742_s3 + $0x48] sm:$0xf]  ;;  %v2309_v50 = vld [vmem:[%s2742_s3 + $0x50] sm:$0xff]  ;;  %vm1118_vm8 = vcmask 7168  }
  0x12   : > { %vm397_vm0 = vcmp.lt.s32.totalorder %v2495_v3, 200  ;;  %2400 = vset.pattern.permute.xlu1 %v2440_v39  ;;  %v2305_v43 = vld [vmem:[%s2742_s3 + $0x40] sm:$0xff]  ;;  %v2310_v54 = vld [vmem:[%s2742_s3 + $0x58] sm:$0xf]  ;;  %v2317_v59 = vld [vmem:[%s2742_s3 + $0x70] sm:$0xff]  ;;  %vm1333_vm9 = vcmask 1039360  }
  0x13   : > { %v405_v6 = vsel %vm397_vm0, %v2503_v5, 0.0  ;;  %v2313_v56 = vld [vmem:[%s2742_s3 + $0x60] sm:$0xff]  ;;  %v2314_v60 = vld [vmem:[%s2742_s3 + $0x68] sm:$0xf]  ;;  %v2318_v2 = vld [vmem:[%s2742_s3 + $0x78] sm:$0xf] }
  0x14   : > { %429 = vrot.lane.b32.xlu0 %v405_v6, %s2426_s20  ;;  %vm1448_vm10 = vcmask 1031168   ;;  %vm1563_vm11 = vcmask 1022976   ;;  %vm1678_vm12 = vcmask 1014784   ;;  %vm1793_vm13 = vcmask 1006592  }
  0x15   : > { %537 = vrot.lane.b32.xlu1 %v2425_v1, %s2427_s25  ;;  %vm1908_vm14 = vcmask 998400   ;;  %vm2023_vm15 = vcmask 990208  }
  0x18   : > { %541 = vrot.lane.b32.xlu0 %v405_v6, %s2427_s25 }
  0x19   : > { %656 = vrot.lane.b32.xlu1 %v405_v6, %s2428_s26 }
  0x1c   : > { %654 = vrot.lane.b32.xlu0 %v2500_v4, %s2428_s26 }
  0x1d   : > { %769 = vrot.lane.b32.xlu1 %v2500_v4, %s2429_s27 }
  0x20   : > { %652 = vrot.lane.b32.xlu0 %v2425_v1, %s2428_s26 }
  0x21   : > { %767 = vrot.lane.b32.xlu1 %v2425_v1, %s2429_s27 }
  0x24   : > { %771 = vrot.lane.b32.xlu0 %v405_v6, %s2429_s27 }
  0x25   : > { %886 = vrot.lane.b32.xlu1 %v405_v6, %s2430_s28 }
  0x28   : > { %884 = vrot.lane.b32.xlu0 %v2500_v4, %s2430_s28 }
  0x29   : > { %999 = vrot.lane.b32.xlu1 %v2500_v4, %s2431_s29 }
  0x2c   : > { %882 = vrot.lane.b32.xlu0 %v2425_v1, %s2430_s28 }
  0x2d   : > { %997 = vrot.lane.b32.xlu1 %v2425_v1, %s2431_s29 }
  0x30   : > { %1001 = vrot.lane.b32.xlu0 %v405_v6, %s2431_s29 }
  0x31   : > { %1116 = vrot.lane.b32.xlu1 %v405_v6, %s2432_s30 }
  0x34   : > { %1114 = vrot.lane.b32.xlu0 %v2500_v4, %s2432_s30 }
  0x35   : > { %1329 = vrot.lane.b32.xlu1 %v405_v6, %s2433_s6 }
  0x38   : > { %1112 = vrot.lane.b32.xlu0 %v2425_v1, %s2432_s30 }
  0x39   : > { %1327 = vrot.lane.b32.xlu1 %v2500_v4, %s2433_s6 }
  0x3c   : > { %1331 = vrot.lane.b32.xlu0 %v2425_v1, %s2433_s6 }
  0x3d   : > { %1446 = vrot.lane.b32.xlu1 %v2425_v1, %s2434_s7 }
  0x40   : > { %1444 = vrot.lane.b32.xlu0 %v405_v6, %s2434_s7 }
  0x41   : > { %1559 = vrot.lane.b32.xlu1 %v405_v6, %s2435_s8 }
  0x44   : > { %1442 = vrot.lane.b32.xlu0 %v2500_v4, %s2434_s7 }
  0x45   : > { %1557 = vrot.lane.b32.xlu1 %v2500_v4, %s2435_s8 }
  0x48   : > { %1561 = vrot.lane.b32.xlu0 %v2425_v1, %s2435_s8  ;;  %s2355_s8 = sshll.u32 %s2750_s18, 5 }
  0x49   : > { %1676 = vrot.lane.b32.xlu1 %v2425_v1, %s2436_s9 }
  0x4c   : > { %1674 = vrot.lane.b32.xlu0 %v405_v6, %s2436_s9 }
  0x4d   : > { %1789 = vrot.lane.b32.xlu1 %v405_v6, %s2437_s10 }
  0x50   : > { %1672 = vrot.lane.b32.xlu0 %v2500_v4, %s2436_s9 }
  0x51   : > { %1787 = vrot.lane.b32.xlu1 %v2500_v4, %s2437_s10 }
  0x54   : > { %1791 = vrot.lane.b32.xlu0 %v2425_v1, %s2437_s10 }
  0x55   : > { %1906 = vrot.lane.b32.xlu1 %v2425_v1, %s2438_s11 }
  0x58   : > { %1904 = vrot.lane.b32.xlu0 %v405_v6, %s2438_s11 }
  0x59   : > { %2019 = vrot.lane.b32.xlu1 %v405_v6, %s2439_s12 }
  0x5c   : > { %1902 = vrot.lane.b32.xlu0 %v2500_v4, %s2438_s11  ;;  %s2719_s11 = scalar_lea.vmem %s2744_s5, %s2355_s8 }
  0x5d   : > { %2017 = vrot.lane.b32.xlu1 %v2500_v4, %s2439_s12 }
  0x60   : > { %2021 = vrot.lane.b32.xlu0 %v2425_v1, %s2439_s12 }
  0x64   : > { %2127 = vperm.xlu0 %2399, %v2123_v40  }
  0x7f   : > { %v426_v7 = vpop.permute.xlu1 %425 }
  0x82   : > { %v428_v8 = vpop.permute.xlu0 %427 }
  0x83   : > { %v540_v9 = vpop.permute.xlu1 %539  ;;  %v432_v15 = vsel %vm431_vm1, %v426_v7, %v428_v8 }
  0x86   : > { %v430_v10 = vpop.permute.xlu0 %429 }
  0x87   : > { %v538_v11 = vpop.permute.xlu1 %537  ;;  %v433_v12 = vsel %vm431_vm1, %v428_v8, %v430_v10  ;;  %v2322_v8 = vld [vmem:[%s2742_s3 + $0x88] sm:$0xf]  ;;  %v2325_v10 = vld [vmem:[%s2742_s3 + $0x90] sm:$0xff] }
  0x88   : > { %473 = vmatprep.subr.mxu0 %v433_v12  ;;  %2357 = vmatprep.subr.mxu1 %v433_v12  ;;  %v544_v20 = vsel %vm543_vm3, %v538_v11, %v540_v9 }
  0x89   : > { %474 = vmatpush1.msra.mxu0 %v432_v15  ;;  %2358 = vmatpush1.msra.mxu1 %v432_v15 }
  0x8a   : > { %2291 = vmatmul.mubr.msk.f32.vlgmr.msra.gmra.mxu0 %vm436_vm2, %v417_v13  ;;  %2292 = vmatmul.mubr.msk.f32.vlgmr.msra.gmra.mxu1 %vm436_vm2, %v418_v14  ;;  %v542_v16 = vpop.permute.xlu0 %541  ;;  %v2326_v14 = vld [vmem:[%s2742_s3 + $0x98] sm:$0xf] }
  0x8b   : > { %v657_v17 = vpop.permute.xlu1 %656  ;;  %v545_v18 = vsel %vm543_vm3, %v540_v9, %v542_v16  ;;  %618 = vmatprep.mubr.f32.mxu1 %v2425_v1  ;;  %733 = vmatprep.mubr.f32.mxu0 %v2425_v1 }
  0x8c   : > { %584 = vmatprep.subr.mxu1 %v545_v18 }
  0x8d   : > { %585 = vmatpush1.msra.mxu1 %v544_v20 }
  0x8e   : > { %2295 = vmatmul.mubr.msk.f32.vlgmr.msra.gmra.mxu1 %vm436_vm2, %v2293_v19  ;;  %v655_v21 = vpop.permute.xlu0 %654 }
  0x8f   : > { %v770_v22 = vpop.permute.xlu1 %769  ;;  %624 = vmatprep.mubr.f32.mxu1 %v2425_v1  ;;  %v660_v24 = vsel %vm658_vm4, %v655_v21, %v657_v17  ;;  %v2329_v17 = vld [vmem:[%s2742_s3 + $0xa0] sm:$0xff] }
  0x90   : > { %699 = vmatprep.subr.mxu0 %v660_v24  ;;  %v2333_v24 = vld [vmem:[%s2742_s3 + $0xb0] sm:$0xff] }
  0x92   : > { %2296 = vmatmul.mubr.msk.f32.gmra.mxu1 %vm436_vm2, %v2294_v23  ;;  %v653_v25 = vpop.permute.xlu0 %652 }
  0x93   : > { %v768_v26 = vpop.permute.xlu1 %767  ;;  %v659_v28 = vsel %vm658_vm4, %v653_v25, %v655_v21  ;;  %848 = vmatprep.mubr.f32.mxu1 %v2425_v1  ;;  %v2330_v21 = vld [vmem:[%s2742_s3 + $0xa8] sm:$0xf] }
  0x94   : > { %700 = vmatpush1.msra.mxu0 %v659_v28  ;;  %v774_v30 = vsel %vm773_vm5, %v768_v26, %v770_v22  ;;  %v2334_v28 = vld [vmem:[%s2742_s3 + $0xb8] sm:$0xf] }
  0x95   : > { %2299 = vmatmul.mubr.msk.f32.vlgmr.msra.gmra.mxu0 %vm436_vm2, %v2297_v27 }
  0x96   : > { %v772_v29 = vpop.permute.xlu0 %771  ;;  %739 = vmatprep.mubr.f32.mxu0 %v2425_v1 }
  0x97   : > { %v887_v32 = vpop.permute.xlu1 %886  ;;  %v775_v33 = vsel %vm773_vm5, %v770_v22, %v772_v29 }
  0x98   : > { %814 = vmatprep.subr.mxu1 %v775_v33 }
  0x99   : > { %815 = vmatpush1.msra.mxu1 %v774_v30  ;;  %2300 = vmatmul.mubr.msk.f32.gmra.mxu0 %vm436_vm2, %v2298_v31  ;;  %v2337_v31 = vld [vmem:[%s2742_s3 + $0xc0] sm:$0xff] }
  0x9a   : > { %v885_v35 = vpop.permute.xlu0 %884  ;;  %2303 = vmatmul.mubr.msk.f32.vlgmr.msra.gmra.mxu1 %vm436_vm2, %v2301_v34  ;;  %963 = vmatprep.mubr.f32.mxu0 %v2425_v1 }
  0x9b   : > { %v1000_v36 = vpop.permute.xlu1 %999  ;;  %v890_v37 = vsel %vm888_vm6, %v885_v35, %v887_v32  ;;  %854 = vmatprep.mubr.f32.mxu1 %v2425_v1 }
  0x9c   : > { %929 = vmatprep.subr.mxu0 %v890_v37  ;;  %v2341_v37 = vld [vmem:[%s2742_s3 + $0xd0] sm:$0xff] }
  0x9e   : > { %v883_v41 = vpop.permute.xlu0 %882  ;;  %2304 = vmatmul.mubr.msk.f32.gmra.mxu1 %vm436_vm2, %v2302_v38 }
  0x9f   : > { %v998_v42 = vpop.permute.xlu1 %997  ;;  %v889_v44 = vsel %vm888_vm6, %v883_v41, %v885_v35  ;;  %1078 = vmatprep.mubr.f32.mxu1 %v2425_v1  ;;  %v2338_v35 = vld [vmem:[%s2742_s3 + $0xc8] sm:$0xf] }
  0xa0   : > { %930 = vmatpush1.msra.mxu0 %v889_v44  ;;  %v1004_v46 = vsel %vm1003_vm7, %v998_v42, %v1000_v36  ;;  %v2342_v42 = vld [vmem:[%s2742_s3 + $0xd8] sm:$0xf]  ;;  %v2345_v44 = vld [vmem:[%s2742_s3 + $0xe0] sm:$0xff] }
  0xa1   : > { %2307 = vmatmul.mubr.msk.f32.vlgmr.msra.gmra.mxu0 %vm436_vm2, %v2305_v43 }
  0xa2   : > { %v1002_v45 = vpop.permute.xlu0 %1001  ;;  %969 = vmatprep.mubr.f32.mxu0 %v2425_v1 }
  0xa3   : > { %v1117_v48 = vpop.permute.xlu1 %1116  ;;  %v1005_v49 = vsel %vm1003_vm7, %v1000_v36, %v1002_v45  ;;  %v2346_v45 = vld [vmem:[%s2742_s3 + $0xe8] sm:$0xf] }
  0xa4   : > { %1044 = vmatprep.subr.mxu1 %v1005_v49 }
  0xa5   : > { %1045 = vmatpush1.msra.mxu1 %v1004_v46  ;;  %2308 = vmatmul.mubr.msk.f32.gmra.mxu0 %vm436_vm2, %v2306_v47  ;;  %v2124_v46 = vld [vmem:[%s2743_s4 + $0x8] sm:$0xf] }
  0xa6   : > { %v1115_v51 = vpop.permute.xlu0 %1114  ;;  %2311 = vmatmul.mubr.msk.f32.vlgmr.msra.gmra.mxu1 %vm436_vm2, %v2309_v50  ;;  %1193 = vmatprep.mubr.f32.mxu0 %v2425_v1 }
  0xa7   : > { %v1330_v52 = vpop.permute.xlu1 %1329  ;;  %v1120_v53 = vsel %vm1118_vm8, %v1115_v51, %v1117_v48  ;;  %1084 = vmatprep.mubr.f32.mxu1 %v2425_v1  ;;  %2356 = vmatprep.subr.msk.mxu1 %vm397_vm0, %v2503_v5 }
  0xa8   : > { %1159 = vmatprep.subr.mxu0 %v1120_v53  ;;  %1260 = vmatpush1.msra.mxu1 %v2500_v4  ;;  %v2321_v4 = vld [vmem:[%s2742_s3 + $0x80] sm:$0xff] }
  0xa9   : > { %2132 = vperm.xlu1 %2400, %v2124_v46  }
  0xaa   : > { %v1113_v55 = vpop.permute.xlu0 %1112  ;;  %2312 = vmatmul.mubr.msk.f32.gmra.mxu1 %vm436_vm2, %v2310_v54 }
  0xab   : > { %v1328_v57 = vpop.permute.xlu1 %1327  ;;  %v1119_v58 = vsel %vm1118_vm8, %v1113_v55, %v1115_v51  ;;  %1293 = vmatprep.mubr.f32.mxu1 %v2425_v1 }
  0xac   : > { %1160 = vmatpush1.msra.mxu0 %v1119_v58  ;;  %v1334_v63 = vsel %vm1333_vm9, %v1328_v57, %v1330_v52 }
  0xad   : > { %2315 = vmatmul.mubr.msk.f32.vlgmr.msra.gmra.mxu0 %vm436_vm2, %v2313_v56 }
  0xae   : > { %1199 = vmatprep.mubr.f32.mxu0 %v2425_v1  ;;  %v1332_v61 = vpop.permute.xlu0 %1331  ;;  %2319 = vmatmul.mubr.msk.f32.vlgmr.msra.gmra.mxu1 %vm436_vm2, %v2317_v59 }
  0xaf   : > { %v1447_v62 = vpop.permute.xlu1 %1446  ;;  %v1335_v0 = vsel %vm1333_vm9, %v1330_v52, %v1332_v61  ;;  %1299 = vmatprep.mubr.f32.mxu1 %v2425_v1 }
  0xb0   : > { %1374 = vmatprep.subr.mxu0 %v1335_v0 }
  0xb1   : > { %2316 = vmatmul.mubr.msk.f32.gmra.mxu0 %vm436_vm2, %v2314_v60 }
  0xb2   : > { %1375 = vmatpush1.msra.mxu0 %v1334_v63  ;;  %2320 = vmatmul.mubr.msk.f32.gmra.mxu1 %vm436_vm2, %v2318_v2  ;;  %v1445_v3 = vpop.permute.xlu0 %1444 }
  0xb3   : > { %v1560_v5 = vpop.permute.xlu1 %1559  ;;  %1408 = vmatprep.mubr.f32.mxu0 %v2425_v1  ;;  %v1450_v6 = vsel %vm1448_vm10, %v1445_v3, %v1447_v62  ;;  %1523 = vmatprep.mubr.f32.mxu1 %v2425_v1 }
  0xb4   : > { %1489 = vmatprep.subr.mxu1 %v1450_v6 }
  0xb5   : > { %2323 = vmatmul.mubr.msk.f32.vlgmr.msra.gmra.mxu0 %vm436_vm2, %v2321_v4 }
  0xb6   : > { %v1443_v7 = vpop.permute.xlu0 %1442  ;;  %1414 = vmatprep.mubr.f32.mxu0 %v2425_v1 }
  0xb7   : > { %v1558_v9 = vpop.permute.xlu1 %1557  ;;  %v1449_v11 = vsel %vm1448_vm10, %v1443_v7, %v1445_v3 }
  0xb8   : > { %1490 = vmatpush1.msra.mxu1 %v1449_v11  ;;  %v1564_v13 = vsel %vm1563_vm11, %v1558_v9, %v1560_v5 }
  0xb9   : > { %2324 = vmatmul.mubr.msk.f32.gmra.mxu0 %vm436_vm2, %v2322_v8  ;;  %2327 = vmatmul.mubr.msk.f32.vlgmr.msra.gmra.mxu1 %vm436_vm2, %v2325_v10 }
  0xba   : > { %v1562_v12 = vpop.permute.xlu0 %1561  ;;  %1529 = vmatprep.mubr.f32.mxu1 %v2425_v1  ;;  %1638 = vmatprep.mubr.f32.mxu0 %v2425_v1 }
  0xbb   : > { %v1677_v15 = vpop.permute.xlu1 %1676  ;;  %v1565_v16 = vsel %vm1563_vm11, %v1560_v5, %v1562_v12 }
  0xbc   : > { %1604 = vmatprep.subr.mxu0 %v1565_v16 }
  0xbd   : > { %1605 = vmatpush1.msra.mxu0 %v1564_v13  ;;  %2328 = vmatmul.mubr.msk.f32.gmra.mxu1 %vm436_vm2, %v2326_v14 }
  0xbe   : > { %v1675_v18 = vpop.permute.xlu0 %1674  ;;  %2331 = vmatmul.mubr.msk.f32.vlgmr.msra.gmra.mxu0 %vm436_vm2, %v2329_v17  ;;  %1753 = vmatprep.mubr.f32.mxu1 %v2425_v1 }
  0xbf   : > { %v1790_v19 = vpop.permute.xlu1 %1789  ;;  %v1680_v20 = vsel %vm1678_vm12, %v1675_v18, %v1677_v15  ;;  %1644 = vmatprep.mubr.f32.mxu0 %v2425_v1 }
  0xc0   : > { %1719 = vmatprep.subr.mxu1 %v1680_v20 }
  0xc2   : > { %v1673_v22 = vpop.permute.xlu0 %1672  ;;  %2332 = vmatmul.mubr.msk.f32.gmra.mxu0 %vm436_vm2, %v2330_v21 }
  0xc3   : > { %v1788_v23 = vpop.permute.xlu1 %1787  ;;  %v1679_v25 = vsel %vm1678_vm12, %v1673_v22, %v1675_v18  ;;  %1868 = vmatprep.mubr.f32.mxu0 %v2425_v1 }
  0xc4   : > { %1720 = vmatpush1.msra.mxu1 %v1679_v25  ;;  %v1794_v27 = vsel %vm1793_vm13, %v1788_v23, %v1790_v19 }
  0xc5   : > { %2335 = vmatmul.mubr.msk.f32.vlgmr.msra.gmra.mxu1 %vm436_vm2, %v2333_v24 }
  0xc6   : > { %v1792_v26 = vpop.permute.xlu0 %1791  ;;  %1759 = vmatprep.mubr.f32.mxu1 %v2425_v1 }
  0xc7   : > { %v1907_v29 = vpop.permute.xlu1 %1906  ;;  %v1795_v30 = vsel %vm1793_vm13, %v1790_v19, %v1792_v26 }
  0xc8   : > { %1834 = vmatprep.subr.mxu0 %v1795_v30 }
  0xc9   : > { %1835 = vmatpush1.msra.mxu0 %v1794_v27  ;;  %2336 = vmatmul.mubr.msk.f32.gmra.mxu1 %vm436_vm2, %v2334_v28 }
  0xca   : > { %v1905_v32 = vpop.permute.xlu0 %1904  ;;  %2339 = vmatmul.mubr.msk.f32.vlgmr.msra.gmra.mxu0 %vm436_vm2, %v2337_v31  ;;  %1983 = vmatprep.mubr.f32.mxu1 %v2425_v1 }
  0xcb   : > { %v2020_v33 = vpop.permute.xlu1 %2019  ;;  %v1910_v34 = vsel %vm1908_vm14, %v1905_v32, %v1907_v29  ;;  %1874 = vmatprep.mubr.f32.mxu0 %v2425_v1 }
  0xcc   : > { %1949 = vmatprep.subr.mxu1 %v1910_v34 }
  0xce   : > { %v1903_v36 = vpop.permute.xlu0 %1902  ;;  %2340 = vmatmul.mubr.msk.f32.gmra.mxu0 %vm436_vm2, %v2338_v35 }
  0xcf   : > { %v1909_v38 = vsel %vm1908_vm14, %v1903_v36, %v1905_v32  ;;  %v2018_v39 = vpop.permute.xlu1 %2017  ;;  %2098 = vmatprep.mubr.f32.mxu0 %v2425_v1 }
  0xd0   : > { %1950 = vmatpush1.msra.mxu1 %v1909_v38  ;;  %v2024_v41 = vsel %vm2023_vm15, %v2018_v39, %v2020_v33 }
  0xd1   : > { %2343 = vmatmul.mubr.msk.f32.vlgmr.msra.gmra.mxu1 %vm436_vm2, %v2341_v37 }
  0xd2   : > { %v2022_v40 = vpop.permute.xlu0 %2021  ;;  %1989 = vmatprep.mubr.f32.mxu1 %v2425_v1 }
  0xd3   : > { %v2025_v43 = vsel %vm2023_vm15, %v2020_v33, %v2022_v40 }
  0xd4   : > { %2064 = vmatprep.subr.mxu0 %v2025_v43 }
  0xd5   : > { %2065 = vmatpush1.msra.mxu0 %v2024_v41  ;;  %2344 = vmatmul.mubr.msk.f32.gmra.mxu1 %vm436_vm2, %v2342_v42 }
  0xd6   : > { %2347 = vmatmul.mubr.msk.f32.vlgmr.msra.gmra.mxu0 %vm436_vm2, %v2345_v44 }
  0xd7   : > { %2104 = vmatprep.mubr.f32.mxu0 %v2425_v1 }
  0xda   : > { %2348 = vmatmul.mubr.msk.f32.gmra.mxu0 %vm436_vm2, %v2346_v45 }
 0x14a   : > { %v515_v47 = vpop.f32.mrf.mxu1  ;;  %v509_v50 = vpop.f32.mrf.mxu0 }
 0x14b   : > { %522 = vst [vmem:[#allocation3 + $0x18] sm:$0xf] %v515_v47 }
 0x14c   : > { %v517_v48 = vpop.f32.mrf.mxu1  ;;  %v511_v53 = vpop.f32.mrf.mxu0 }
 0x14d   : > { %523 = vst [vmem:[#allocation3 + $0x8] sm:$0xf] %v517_v48 }
 0x14e   : > { %v620_v49 = vpop.f32.mrf.mxu1 }
 0x14f   : > { %v631_v36 = vadd.f32 %v620_v49, %v509_v50 }
 0x150   : > { %v622_v51 = vpop.f32.mrf.mxu1 }
 0x151   : > { %v632_v41 = vadd.f32 %v622_v51, %v511_v53 }
 0x152   : > { %v526_v52 = vld [vmem:[#allocation3 + $0x18] sm:$0xf]  ;;  %v626_v1 = vpop.f32.mrf.mxu1 }
 0x153   : > { %v633_v54 = vadd.f32 %v626_v1, %v526_v52 }
 0x154   : > { %v527_v55 = vld [vmem:[#allocation3 + $0x8] sm:$0xf]  ;;  %v628_v56 = vpop.f32.mrf.mxu1 }
 0x155   : > { %637 = vst [vmem:[#allocation3 + $0x18] sm:$0xf] %v633_v54  ;;  %v634_v57 = vadd.f32 %v628_v56, %v527_v55  ;;  %v735_v58 = vpop.f32.mrf.mxu0 }
 0x156   : > { %v746_v42 = vadd.f32 %v735_v58, %v631_v36 }
 0x157   : > { %638 = vst [vmem:[#allocation3 + $0x8] sm:$0xf] %v634_v57  ;;  %v737_v59 = vpop.f32.mrf.mxu0 }
 0x158   : > { %v747_v46 = vadd.f32 %v737_v59, %v632_v41 }
 0x159   : > { %v741_v60 = vpop.f32.mrf.mxu0 }
 0x15a   : > { %v850_v61 = vpop.f32.mrf.mxu1 }
 0x15b   : > { %v743_v3 = vpop.f32.mrf.mxu0  ;;  %v861_v47 = vadd.f32 %v850_v61, %v746_v42 }
 0x15c   : > { %v641_v62 = vld [vmem:[#allocation3 + $0x18] sm:$0xf]  ;;  %v852_v63 = vpop.f32.mrf.mxu1 }
 0x15d   : > { %v748_v0 = vadd.f32 %v741_v60, %v641_v62  ;;  %v862_v52 = vadd.f32 %v852_v63, %v747_v46 }
 0x15e   : > { %v642_v2 = vld [vmem:[#allocation3 + $0x8] sm:$0xf]  ;;  %v856_v4 = vpop.f32.mrf.mxu1 }
 0x15f   : > { %752 = vst [vmem:[#allocation3 + $0x18] sm:$0xf] %v748_v0  ;;  %v749_v5 = vadd.f32 %v743_v3, %v642_v2 }
 0x160   : > { %v858_v7 = vpop.f32.mrf.mxu1 }
 0x161   : > { %753 = vst [vmem:[#allocation3 + $0x8] sm:$0xf] %v749_v5  ;;  %v965_v6 = vpop.f32.mrf.mxu0 }
 0x162   : > { %v976_v1 = vadd.f32 %v965_v6, %v861_v47 }
 0x163   : > { %v967_v8 = vpop.f32.mrf.mxu0 }
 0x164   : > { %v977_v50 = vadd.f32 %v967_v8, %v862_v52 }
 0x165   : > { %v971_v9 = vpop.f32.mrf.mxu0 }
 0x166   : > { %v756_v10 = vld [vmem:[#allocation3 + $0x18] sm:$0xf]  ;;  %v1080_v11 = vpop.f32.mrf.mxu1 }
 0x167   : > { %v863_v12 = vadd.f32 %v856_v4, %v756_v10  ;;  %v973_v16 = vpop.f32.mrf.mxu0  ;;  %v1091_v55 = vadd.f32 %v1080_v11, %v976_v1 }
 0x168   : > { %v757_v13 = vld [vmem:[#allocation3 + $0x8] sm:$0xf]  ;;  %v1082_v14 = vpop.f32.mrf.mxu1 }
 0x169   : > { %867 = vst [vmem:[#allocation3 + $0x18] sm:$0xf] %v863_v12  ;;  %v864_v15 = vadd.f32 %v858_v7, %v757_v13  ;;  %v1092_v51 = vadd.f32 %v1082_v14, %v977_v50 }
 0x16a   : > { %v1086_v17 = vpop.f32.mrf.mxu1 }
 0x16b   : > { %868 = vst [vmem:[#allocation3 + $0x8] sm:$0xf] %v864_v15 }
 0x16c   : > { %v1088_v18 = vpop.f32.mrf.mxu1 }
 0x16d   : > { %v1195_v19 = vpop.f32.mrf.mxu0 }
 0x16e   : > { %v1295_v20 = vpop.f32.mrf.mxu1  ;;  %v1206_v53 = vadd.f32 %v1195_v19, %v1091_v55 }
 0x16f   : > { %v1197_v21 = vpop.f32.mrf.mxu0 }
 0x170   : > { %v871_v22 = vld [vmem:[#allocation3 + $0x18] sm:$0xf]  ;;  %v1297_v23 = vpop.f32.mrf.mxu1  ;;  %v1207_v59 = vadd.f32 %v1197_v21, %v1092_v51  ;;  %v1306_v63 = vadd.f32 %v1295_v20, %v1206_v53 }
 0x171   : > { %v978_v24 = vadd.f32 %v971_v9, %v871_v22  ;;  %v1201_v25 = vpop.f32.mrf.mxu0 }
 0x172   : > { %v872_v26 = vld [vmem:[#allocation3 + $0x8] sm:$0xf]  ;;  %v1301_v27 = vpop.f32.mrf.mxu1  ;;  %v1307_v4 = vadd.f32 %v1297_v23, %v1207_v59 }
 0x173   : > { %982 = vst [vmem:[#allocation3 + $0x18] sm:$0xf] %v978_v24  ;;  %v979_v28 = vadd.f32 %v973_v16, %v872_v26  ;;  %v1203_v29 = vpop.f32.mrf.mxu0 }
 0x174   : > { %v1303_v30 = vpop.f32.mrf.mxu1 }
 0x175   : > { %983 = vst [vmem:[#allocation3 + $0x8] sm:$0xf] %v979_v28  ;;  %v1410_v31 = vpop.f32.mrf.mxu0  ;;  %v2128_v28 = vpop.permute.xlu0 %2127 }
 0x176   : > { %v1421_v5 = vadd.f32 %v1410_v31, %v1306_v63 }
 0x177   : > { %v1412_v32 = vpop.f32.mrf.mxu0 }
 0x178   : > { %v1422_v7 = vadd.f32 %v1412_v32, %v1307_v4 }
 0x179   : > { %v2699_v33 = vpop.f32.mrf.mxu0  ;;  %v1525_v34 = vpop.f32.mrf.mxu1 }
 0x17a   : > { %v986_v35 = vld [vmem:[#allocation3 + $0x18] sm:$0xf]  ;;  %v1536_v8 = vadd.f32 %v1525_v34, %v1421_v5 }
 0x17b   : > { %v1093_v37 = vadd.f32 %v1086_v17, %v986_v35  ;;  %v2701_v38 = vpop.f32.mrf.mxu0  ;;  %v1527_v39 = vpop.f32.mrf.mxu1 }
 0x17c   : > { %v987_v40 = vld [vmem:[#allocation3 + $0x8] sm:$0xf]  ;;  %v1537_v13 = vadd.f32 %v1527_v39, %v1422_v7 }
 0x17d   : > { %1097 = vst [vmem:[#allocation3 + $0x18] sm:$0xf] %v1093_v37  ;;  %v1094_v43 = vadd.f32 %v1088_v18, %v987_v40  ;;  %v2703_v44 = vpop.f32.mrf.mxu1 }
 0x17e   : > { %v1640_v45 = vpop.f32.mrf.mxu0 }
 0x17f   : > { %1098 = vst [vmem:[#allocation3 + $0x8] sm:$0xf] %v1094_v43  ;;  %v2705_v54 = vpop.f32.mrf.mxu1  ;;  %v1651_v14 = vadd.f32 %v1640_v45, %v1536_v8 }
 0x180   : > { %v1642_v48 = vpop.f32.mrf.mxu0 }
 0x181   : > { %v1652_v17 = vadd.f32 %v1642_v48, %v1537_v13 }
 0x182   : > { %v2707_v49 = vpop.f32.mrf.mxu0 }
 0x184   : > { %v1101_v56 = vld [vmem:[#allocation3 + $0x18] sm:$0xf]  ;;  %v2709_v62 = vpop.f32.mrf.mxu0 }
 0x185   : > { %v1208_v57 = vadd.f32 %v1201_v25, %v1101_v56  ;;  %v1755_v58 = vpop.f32.mrf.mxu1 }
 0x186   : > { %v1102_v60 = vld [vmem:[#allocation3 + $0x8] sm:$0xf]  ;;  %v1766_v18 = vadd.f32 %v1755_v58, %v1651_v14 }
 0x187   : > { %1212 = vst [vmem:[#allocation3 + $0x18] sm:$0xf] %v1208_v57  ;;  %v1209_v61 = vadd.f32 %v1203_v29, %v1102_v60  ;;  %v1757_v0 = vpop.f32.mrf.mxu1 }
 0x188   : > { %v1767_v21 = vadd.f32 %v1757_v0, %v1652_v17 }
 0x189   : > { %1213 = vst [vmem:[#allocation3 + $0x8] sm:$0xf] %v1209_v61  ;;  %v2711_v2 = vpop.f32.mrf.mxu1 }
 0x18a   : > { %v1870_v3 = vpop.f32.mrf.mxu0 }
 0x18b   : > { %v1763_v9 = vpop.f32.mrf.mxu1  ;;  %v1881_v22 = vadd.f32 %v1870_v3, %v1766_v18 }
 0x18c   : > { %v1872_v6 = vpop.f32.mrf.mxu0 }
 0x18d   : > { %v1882_v24 = vadd.f32 %v1872_v6, %v1767_v21  ;;  %v2133_v6 = vpop.permute.xlu1 %2132 }
 0x18e   : > { %v1216_v10 = vld [vmem:[#allocation3 + $0x18] sm:$0xf]  ;;  %v1876_v11 = vpop.f32.mrf.mxu0 }
 0x18f   : > { %v1308_v12 = vadd.f32 %v1301_v27, %v1216_v10 }
 0x190   : > { %v1217_v15 = vld [vmem:[#allocation3 + $0x8] sm:$0xf]  ;;  %v1878_v20 = vpop.f32.mrf.mxu0 }
 0x191   : > { %1312 = vst [vmem:[#allocation3 + $0x18] sm:$0xf] %v1308_v12  ;;  %v1309_v16 = vadd.f32 %v1303_v30, %v1217_v15  ;;  %v1985_v19 = vpop.f32.mrf.mxu1 }
 0x192   : > { %v1996_v25 = vadd.f32 %v1985_v19, %v1881_v22 }
 0x193   : > { %1313 = vst [vmem:[#allocation3 + $0x8] sm:$0xf] %v1309_v16  ;;  %v1987_v23 = vpop.f32.mrf.mxu1 }
 0x194   : > { %v1997_v29 = vadd.f32 %v1987_v23, %v1882_v24 }
 0x195   : > { %v1991_v58 = vpop.f32.mrf.mxu1 }
 0x196   : > { %v2100_v26 = vpop.f32.mrf.mxu0 }
 0x197   : > { %v2111_v27 = vadd.f32 %v2100_v26, %v1996_v25  ;;  %v1993_v61 = vpop.f32.mrf.mxu1 }
 0x198   : > { %v1316_v31 = vld [vmem:[#allocation3 + $0x18] sm:$0xf]  ;;  %v2102_v32 = vpop.f32.mrf.mxu0 }
 0x199   : > { %v1423_v30 = vadd.f32 %v2699_v33, %v1316_v31  ;;  %v2112_v34 = vadd.f32 %v2102_v32, %v1997_v29  ;;  %v2135_v35 = vadd.f32 %v2128_v28, %v2111_v27 }
 0x19a   : > { %v1317_v36 = vld [vmem:[#allocation3 + $0x8] sm:$0xf]  ;;  %v2106_v0 = vpop.f32.mrf.mxu0 }
 0x19b   : > { %1427 = vst [vmem:[#allocation3 + $0x18] sm:$0xf] %v1423_v30  ;;  %v1424_v37 = vadd.f32 %v2701_v38, %v1317_v36  ;;  %v2136_v39 = vadd.f32 %v2128_v28, %v2112_v34  ;;  %vm2139_vm0 = vcmp.ge.f32.partialorder %v2135_v35, 0.0  ;;  %v2143_v40 = vmul.f32 0.01, %v2135_v35 }
 0x19c   : > { %v2108_v4 = vpop.f32.mrf.mxu0 }
 0x19d   : > { %1428 = vst [vmem:[#allocation3 + $0x8] sm:$0xf] %v1424_v37  ;;  %vm2140_vm1 = vcmp.ge.f32.partialorder %v2136_v39, 0.0  ;;  %v2144_v41 = vmul.f32 0.01, %v2136_v39  ;;  %v2147_v33 = vsel %vm2139_vm0, %v2135_v35, %v2143_v40 }
 0x19e   : > { %2151 = vst [vmem:[%s2719_s11] sm:$0xff] %v2147_v33 }
 0x19f   : > { %v2148_v42 = vsel %vm2140_vm1, %v2136_v39, %v2144_v41 }
 0x1a0   : > { %2152 = vst [vmem:[%s2719_s11 + $0x8] sm:$0xff] %v2148_v42 }
 0x1a2   : > { %v1431_v43 = vld [vmem:[#allocation3 + $0x18] sm:$0xf] }
 0x1a3   : > { %v1538_v38 = vadd.f32 %v2703_v44, %v1431_v43 }
 0x1a4   : > { %v1432_v45 = vld [vmem:[#allocation3 + $0x8] sm:$0xf] }
 0x1a5   : > { %1542 = vst [vmem:[#allocation3 + $0x18] sm:$0xf] %v1538_v38  ;;  %v1539_v46 = vadd.f32 %v2705_v54, %v1432_v45 }
 0x1a7   : > { %1543 = vst [vmem:[#allocation3 + $0x8] sm:$0xf] %v1539_v46 }
 0x1ac   : > { %v1546_v47 = vld [vmem:[#allocation3 + $0x18] sm:$0xf] }
 0x1ad   : > { %v1653_v48 = vadd.f32 %v2707_v49, %v1546_v47 }
 0x1ae   : > { %v1547_v52 = vld [vmem:[#allocation3 + $0x8] sm:$0xf] }
 0x1af   : > { %1657 = vst [vmem:[#allocation3 + $0x18] sm:$0xf] %v1653_v48  ;;  %v1654_v1 = vadd.f32 %v2709_v62, %v1547_v52 }
 0x1b1   : > { %1658 = vst [vmem:[#allocation3 + $0x8] sm:$0xf] %v1654_v1 }
 0x1b6   : > { %v1661_v50 = vld [vmem:[#allocation3 + $0x18] sm:$0xf] }
 0x1b7   : > { %v1768_v55 = vadd.f32 %v2711_v2, %v1661_v50 }
 0x1b8   : > { %v1662_v56 = vld [vmem:[#allocation3 + $0x8] sm:$0xf] }
 0x1b9   : > { %1772 = vst [vmem:[#allocation3 + $0x18] sm:$0xf] %v1768_v55  ;;  %v1769_v51 = vadd.f32 %v1763_v9, %v1662_v56 }
 0x1bb   : > { %1773 = vst [vmem:[#allocation3 + $0x8] sm:$0xf] %v1769_v51 }
 0x1c0   : > { %v1776_v44 = vld [vmem:[#allocation3 + $0x18] sm:$0xf] }
 0x1c1   : > { %v1883_v53 = vadd.f32 %v1876_v11, %v1776_v44 }
 0x1c2   : > { %v1777_v57 = vld [vmem:[#allocation3 + $0x8] sm:$0xf] }
 0x1c3   : > { %1887 = vst [vmem:[#allocation3 + $0x18] sm:$0xf] %v1883_v53  ;;  %v1884_v54 = vadd.f32 %v1878_v20, %v1777_v57 }
 0x1c5   : > { %1888 = vst [vmem:[#allocation3 + $0x8] sm:$0xf] %v1884_v54 }
 0x1ca   : > { %v1891_v49 = vld [vmem:[#allocation3 + $0x18] sm:$0xf] }
 0x1cb   : > { %v1998_v60 = vadd.f32 %v1991_v58, %v1891_v49 }
 0x1cc   : > { %v1892_v59 = vld [vmem:[#allocation3 + $0x8] sm:$0xf] }
 0x1cd   : > { %2002 = vst [vmem:[#allocation3 + $0x18] sm:$0xf] %v1998_v60  ;;  %v1999_v62 = vadd.f32 %v1993_v61, %v1892_v59 }
 0x1cf   : > { %2003 = vst [vmem:[#allocation3 + $0x8] sm:$0xf] %v1999_v62 }
 0x1d4   : > { %v2006_v63 = vld [vmem:[#allocation3 + $0x18] sm:$0xf] }
 0x1d5   : > { %v2113_v2 = vadd.f32 %v2106_v0, %v2006_v63 }
 0x1d6   : > { %v2007_v3 = vld [vmem:[#allocation3 + $0x8] sm:$0xf] }
 0x1d7   : > { %2117 = vst [vmem:[#allocation3 + $0x18] sm:$0xf] %v2113_v2  ;;  %v2114_v5 = vadd.f32 %v2108_v4, %v2007_v3 }
 0x1d9   : > { %2118 = vst [vmem:[#allocation3 + $0x8] sm:$0xf] %v2114_v5 }
 0x1de   : > { %v2121_v7 = vld [vmem:[#allocation3 + $0x18] sm:$0xf] }
 0x1df   : > { %v2137_v8 = vadd.f32 %v2133_v6, %v2121_v7 }
 0x1e0   : > { %v2122_v9 = vld [vmem:[#allocation3 + $0x8] sm:$0xf] }
 0x1e1   : > { %v2138_v10 = vadd.f32 %v2133_v6, %v2122_v9  ;;  %vm2141_vm2 = vcmp.ge.f32.partialorder %v2137_v8, 0.0  ;;  %v2145_v11 = vmul.f32 0.01, %v2137_v8 }
 0x1e3   : > { %vm2142_vm3 = vcmp.ge.f32.partialorder %v2138_v10, 0.0  ;;  %v2146_v12 = vmul.f32 0.01, %v2138_v10  ;;  %v2149_v13 = vsel %vm2141_vm2, %v2137_v8, %v2145_v11 }
 0x1e4   : > { %2153 = vst [vmem:[%s2719_s11 + $0x10] sm:$0xf] %v2149_v13 }
 0x1e5   : > { %v2150_v14 = vsel %vm2142_vm3, %v2138_v10, %v2146_v12 }
 0x1e6   : > { %2154 = vst [vmem:[%s2719_s11 + $0x18] sm:$0xf] %v2150_v14 }
 0x1e7 PF: > { %s15_s0 = sadd.s32 1, %s2423_s0   ;;  %s2745_s18 = smov %s2419_s19 }
 0x1e8   : > { %p12_p5 = scmp.ge.s32.totalorder %s15_s0, 4   ;;  %s2746_s19 = smov %s2748_s2 }
 0x1ea   :  { %14 = sbr.rel (!%p12_p5) target bundleno = 2 (0x2), region = 90 }

// kernel: tpu_custom_call.1
= control target key start
LH: loop header
LB: loop body
LE: loop exit
PB: predicated region body
PF: predicated region fallthrough
CT: control target
= control target key end

     0   :  { %s2471_s18 = smov 0   ;;  %s2473_s19 = smov 0   ;;  %s2739_s0 = inlined_call_operand.vmem [shape: f32[2,8,200], index: 0, kind: input, shape index: {}]   ;;  %s2740_s1 = inlined_call_operand.vmem [shape: f32[2,8,200], index: 1, kind: input, shape index: {}]   ;;  %s2741_s2 = inlined_call_operand.vmem [shape: f32[2,8,200], index: 2, kind: input, shape index: {}]   ;;  %s2742_s3 = inlined_call_operand.vmem [shape: f32[15,12,8], index: 3, kind: input, shape index: {}]   ;;  %s2743_s4 = inlined_call_operand.vmem [shape: f32[12,1], index: 4, kind: input, shape index: {}]   ;;  %s2744_s5 = inlined_call_operand.vmem [shape: f32[2,12,200], index: 5, kind: output, shape index: {}]  }
   0x1   :  { %s2475_s0 = smov 0  }
   0x2 LB: > { %s27_s2 = sadd.s32 1, %s2419_s19  ;;  %p2282_p0 = scmp.ge.s32.totalorder %s2423_s0, 1  ;;  %s2423_s0 = sphi %s2475_s0, %s15_s0   ;;  %s2419_s19 = sphi %s2473_s19, %s2746_s19   ;;  %s2415_s18 = sphi %s2471_s18, %s2745_s18  }
   0x3   : > { %p29_p1 = scmp.ge.s32.totalorder %s27_s2, 2  ;;  %p270_p2 = scmp.lt.s32.totalorder %s2423_s0, 3 }
   0x5   : > { %s2748_s2 = smov (%p29_p1, %s27_s2), 0  ;;  %p271_p3 = pnand %p2282_p0, %p270_p2 }
   0x6   : > { %p347_p4 = scmp.lt.s32.totalorder (!%p271_p3), %s2415_s18, 1  ;;  %s2426_s20 = smov (!%p271_p3), 7  }
   0x7   : > { %274 = sbr.rel (%p271_p3) target bundleno = 487 (0x1e7), region = 40  ;;  %s2427_s25 = smov (!%p271_p3), 6  }
   0x8   : > { %s2428_s26 = smov (!%p271_p3), 5   ;;  %s2429_s27 = smov (!%p271_p3), 4  }
   0x9   : > { %s2430_s28 = smov (!%p271_p3), 3   ;;  %s2431_s29 = smov (!%p271_p3), 2  }
   0xa   : > { %s2432_s30 = smov (!%p271_p3), 1   ;;  %s2433_s6 = smov (!%p271_p3), 127  }
   0xb   : > { %s2434_s7 = smov (!%p271_p3), 126   ;;  %s2435_s8 = smov (!%p271_p3), 125  }
   0xc   : > { %v390_v0 = vlaneseq  ;;  %v2425_v1 = vmov 0.0   ;;  %s2750_s18 = smov (!%p347_p4, %s2415_s18), 1  ;;  %s2436_s9 = smov 124   ;;  %vm431_vm1 = vcmask 56320   ;;  %v417_v13 = vld [vmem:[%s2742_s3] sm:$0xff]  ;;  %vm436_vm2 = vcmask 64512  }
   0xd   : > { %425 = vrot.lane.b32.xlu1 %v2425_v1, %s2426_s20  ;;  %507 = vmatprep.mubr.f32.mxu0 %v2425_v1  ;;  %s2352_s21 = sshll.u32 %s2750_s18, 4  ;;  %s2437_s10 = smov 123   ;;  %v418_v14 = vld [vmem:[%s2742_s3 + $0x8] sm:$0xf]  ;;  %vm543_vm3 = vcmask 48128   ;;  %v2293_v19 = vld [vmem:[%s2742_s3 + $0x10] sm:$0xff] }
   0xe   : > { %v391_v2 = vand.u32 127, %v390_v0  ;;  %513 = vmatprep.mubr.f32.mxu1 %v2425_v1  ;;  %s354_s24 = scalar_lea.vmem %s2740_s1, %s2352_s21  ;;  %s2438_s11 = smov 122   ;;  %vm658_vm4 = vcmask 39936   ;;  %v2294_v23 = vld [vmem:[%s2742_s3 + $0x18] sm:$0xf]  ;;  %v2297_v27 = vld [vmem:[%s2742_s3 + $0x20] sm:$0xff] }
   0xf   : > { %v2500_v4 = vld [vmem:[%s354_s24] sm:$0xff]  ;;  %v2503_v5 = vld [vmem:[%s354_s24 + $0x8] sm:$0xff]  ;;  %s2439_s12 = smov 121   ;;  %vm773_vm5 = vcmask 31744   ;;  %v2301_v34 = vld [vmem:[%s2742_s3 + $0x30] sm:$0xff]  ;;  %vm888_vm6 = vcmask 23552  }
  0x10   : > { %v2495_v3 = vadd.s32 128, %v391_v2  ;;  %427 = vrot.lane.b32.xlu0 %v2500_v4, %s2426_s20  ;;  %v2298_v31 = vld [vmem:[%s2742_s3 + $0x28] sm:$0xf]  ;;  %v2302_v38 = vld [vmem:[%s2742_s3 + $0x38] sm:$0xf]  ;;  %v2440_v39 = vmov 0  }
  0x11   : > { %539 = vrot.lane.b32.xlu1 %v2500_v4, %s2427_s25  ;;  %2399 = vset.pattern.permute.xlu0 %v2440_v39  ;;  %v2123_v40 = vld [vmem:[%s2743_s4] sm:$0xff]  ;;  %vm1003_vm7 = vcmask 15360   ;;  %v2306_v47 = vld [vmem:[%s2742_s3 + $0x48] sm:$0xf]  ;;  %v2309_v50 = vld [vmem:[%s2742_s3 + $0x50] sm:$0xff]  ;;  %vm1118_vm8 = vcmask 7168  }
  0x12   : > { %vm397_vm0 = vcmp.lt.s32.totalorder %v2495_v3, 200  ;;  %2400 = vset.pattern.permute.xlu1 %v2440_v39  ;;  %v2305_v43 = vld [vmem:[%s2742_s3 + $0x40] sm:$0xff]  ;;  %v2310_v54 = vld [vmem:[%s2742_s3 + $0x58] sm:$0xf]  ;;  %v2317_v59 = vld [vmem:[%s2742_s3 + $0x70] sm:$0xff]  ;;  %vm1333_vm9 = vcmask 1039360  }
  0x13   : > { %v405_v6 = vsel %vm397_vm0, %v2503_v5, 0.0  ;;  %v2313_v56 = vld [vmem:[%s2742_s3 + $0x60] sm:$0xff]  ;;  %v2314_v60 = vld [vmem:[%s2742_s3 + $0x68] sm:$0xf]  ;;  %v2318_v2 = vld [vmem:[%s2742_s3 + $0x78] sm:$0xf] }
  0x14   : > { %429 = vrot.lane.b32.xlu0 %v405_v6, %s2426_s20  ;;  %vm1448_vm10 = vcmask 1031168   ;;  %vm1563_vm11 = vcmask 1022976   ;;  %vm1678_vm12 = vcmask 1014784   ;;  %vm1793_vm13 = vcmask 1006592  }
  0x15   : > { %537 = vrot.lane.b32.xlu1 %v2425_v1, %s2427_s25  ;;  %vm1908_vm14 = vcmask 998400   ;;  %vm2023_vm15 = vcmask 990208  }
  0x18   : > { %541 = vrot.lane.b32.xlu0 %v405_v6, %s2427_s25 }
  0x19   : > { %656 = vrot.lane.b32.xlu1 %v405_v6, %s2428_s26 }
  0x1c   : > { %654 = vrot.lane.b32.xlu0 %v2500_v4, %s2428_s26 }
  0x1d   : > { %769 = vrot.lane.b32.xlu1 %v2500_v4, %s2429_s27 }
  0x20   : > { %652 = vrot.lane.b32.xlu0 %v2425_v1, %s2428_s26 }
  0x21   : > { %767 = vrot.lane.b32.xlu1 %v2425_v1, %s2429_s27 }
  0x24   : > { %771 = vrot.lane.b32.xlu0 %v405_v6, %s2429_s27 }
  0x25   : > { %886 = vrot.lane.b32.xlu1 %v405_v6, %s2430_s28 }
  0x28   : > { %884 = vrot.lane.b32.xlu0 %v2500_v4, %s2430_s28 }
  0x29   : > { %999 = vrot.lane.b32.xlu1 %v2500_v4, %s2431_s29 }
  0x2c   : > { %882 = vrot.lane.b32.xlu0 %v2425_v1, %s2430_s28 }
  0x2d   : > { %997 = vrot.lane.b32.xlu1 %v2425_v1, %s2431_s29 }
  0x30   : > { %1001 = vrot.lane.b32.xlu0 %v405_v6, %s2431_s29 }
  0x31   : > { %1116 = vrot.lane.b32.xlu1 %v405_v6, %s2432_s30 }
  0x34   : > { %1114 = vrot.lane.b32.xlu0 %v2500_v4, %s2432_s30 }
  0x35   : > { %1329 = vrot.lane.b32.xlu1 %v405_v6, %s2433_s6 }
  0x38   : > { %1112 = vrot.lane.b32.xlu0 %v2425_v1, %s2432_s30 }
  0x39   : > { %1327 = vrot.lane.b32.xlu1 %v2500_v4, %s2433_s6 }
  0x3c   : > { %1331 = vrot.lane.b32.xlu0 %v2425_v1, %s2433_s6 }
  0x3d   : > { %1446 = vrot.lane.b32.xlu1 %v2425_v1, %s2434_s7 }
  0x40   : > { %1444 = vrot.lane.b32.xlu0 %v405_v6, %s2434_s7 }
  0x41   : > { %1559 = vrot.lane.b32.xlu1 %v405_v6, %s2435_s8 }
  0x44   : > { %1442 = vrot.lane.b32.xlu0 %v2500_v4, %s2434_s7 }
  0x45   : > { %1557 = vrot.lane.b32.xlu1 %v2500_v4, %s2435_s8 }
  0x48   : > { %1561 = vrot.lane.b32.xlu0 %v2425_v1, %s2435_s8  ;;  %s2355_s8 = sshll.u32 %s2750_s18, 5 }
  0x49   : > { %1676 = vrot.lane.b32.xlu1 %v2425_v1, %s2436_s9 }
  0x4c   : > { %1674 = vrot.lane.b32.xlu0 %v405_v6, %s2436_s9 }
  0x4d   : > { %1789 = vrot.lane.b32.xlu1 %v405_v6, %s2437_s10 }
  0x50   : > { %1672 = vrot.lane.b32.xlu0 %v2500_v4, %s2436_s9 }
  0x51   : > { %1787 = vrot.lane.b32.xlu1 %v2500_v4, %s2437_s10 }
  0x54   : > { %1791 = vrot.lane.b32.xlu0 %v2425_v1, %s2437_s10 }
  0x55   : > { %1906 = vrot.lane.b32.xlu1 %v2425_v1, %s2438_s11 }
  0x58   : > { %1904 = vrot.lane.b32.xlu0 %v405_v6, %s2438_s11 }
  0x59   : > { %2019 = vrot.lane.b32.xlu1 %v405_v6, %s2439_s12 }
  0x5c   : > { %1902 = vrot.lane.b32.xlu0 %v2500_v4, %s2438_s11  ;;  %s2719_s11 = scalar_lea.vmem %s2744_s5, %s2355_s8 }
  0x5d   : > { %2017 = vrot.lane.b32.xlu1 %v2500_v4, %s2439_s12 }
  0x60   : > { %2021 = vrot.lane.b32.xlu0 %v2425_v1, %s2439_s12 }
  0x64   : > { %2127 = vperm.xlu0 %2399, %v2123_v40  }
  0x7f   : > { %v426_v7 = vpop.permute.xlu1 %425 }
  0x82   : > { %v428_v8 = vpop.permute.xlu0 %427 }
  0x83   : > { %v540_v9 = vpop.permute.xlu1 %539  ;;  %v432_v15 = vsel %vm431_vm1, %v426_v7, %v428_v8 }
  0x86   : > { %v430_v10 = vpop.permute.xlu0 %429 }
  0x87   : > { %v538_v11 = vpop.permute.xlu1 %537  ;;  %v433_v12 = vsel %vm431_vm1, %v428_v8, %v430_v10  ;;  %v2322_v8 = vld [vmem:[%s2742_s3 + $0x88] sm:$0xf]  ;;  %v2325_v10 = vld [vmem:[%s2742_s3 + $0x90] sm:$0xff] }
  0x88   : > { %473 = vmatprep.subr.mxu0 %v433_v12  ;;  %2357 = vmatprep.subr.mxu1 %v433_v12  ;;  %v544_v20 = vsel %vm543_vm3, %v538_v11, %v540_v9 }
  0x89   : > { %474 = vmatpush1.msra.mxu0 %v432_v15  ;;  %2358 = vmatpush1.msra.mxu1 %v432_v15 }
  0x8a   : > { %2291 = vmatmul.mubr.msk.f32.vlgmr.msra.gmra.mxu0 %vm436_vm2, %v417_v13  ;;  %2292 = vmatmul.mubr.msk.f32.vlgmr.msra.gmra.mxu1 %vm436_vm2, %v418_v14  ;;  %v542_v16 = vpop.permute.xlu0 %541  ;;  %v2326_v14 = vld [vmem:[%s2742_s3 + $0x98] sm:$0xf] }
  0x8b   : > { %v657_v17 = vpop.permute.xlu1 %656  ;;  %v545_v18 = vsel %vm543_vm3, %v540_v9, %v542_v16  ;;  %618 = vmatprep.mubr.f32.mxu1 %v2425_v1  ;;  %733 = vmatprep.mubr.f32.mxu0 %v2425_v1 }
  0x8c   : > { %584 = vmatprep.subr.mxu1 %v545_v18 }
  0x8d   : > { %585 = vmatpush1.msra.mxu1 %v544_v20 }
  0x8e   : > { %2295 = vmatmul.mubr.msk.f32.vlgmr.msra.gmra.mxu1 %vm436_vm2, %v2293_v19  ;;  %v655_v21 = vpop.permute.xlu0 %654 }
  0x8f   : > { %v770_v22 = vpop.permute.xlu1 %769  ;;  %624 = vmatprep.mubr.f32.mxu1 %v2425_v1  ;;  %v660_v24 = vsel %vm658_vm4, %v655_v21, %v657_v17  ;;  %v2329_v17 = vld [vmem:[%s2742_s3 + $0xa0] sm:$0xff] }
  0x90   : > { %699 = vmatprep.subr.mxu0 %v660_v24  ;;  %v2333_v24 = vld [vmem:[%s2742_s3 + $0xb0] sm:$0xff] }
  0x92   : > { %2296 = vmatmul.mubr.msk.f32.gmra.mxu1 %vm436_vm2, %v2294_v23  ;;  %v653_v25 = vpop.permute.xlu0 %652 }
  0x93   : > { %v768_v26 = vpop.permute.xlu1 %767  ;;  %v659_v28 = vsel %vm658_vm4, %v653_v25, %v655_v21  ;;  %848 = vmatprep.mubr.f32.mxu1 %v2425_v1  ;;  %v2330_v21 = vld [vmem:[%s2742_s3 + $0xa8] sm:$0xf] }
  0x94   : > { %700 = vmatpush1.msra.mxu0 %v659_v28  ;;  %v774_v30 = vsel %vm773_vm5, %v768_v26, %v770_v22  ;;  %v2334_v28 = vld [vmem:[%s2742_s3 + $0xb8] sm:$0xf] }
  0x95   : > { %2299 = vmatmul.mubr.msk.f32.vlgmr.msra.gmra.mxu0 %vm436_vm2, %v2297_v27 }
  0x96   : > { %v772_v29 = vpop.permute.xlu0 %771  ;;  %739 = vmatprep.mubr.f32.mxu0 %v2425_v1 }
  0x97   : > { %v887_v32 = vpop.permute.xlu1 %886  ;;  %v775_v33 = vsel %vm773_vm5, %v770_v22, %v772_v29 }
  0x98   : > { %814 = vmatprep.subr.mxu1 %v775_v33 }
  0x99   : > { %815 = vmatpush1.msra.mxu1 %v774_v30  ;;  %2300 = vmatmul.mubr.msk.f32.gmra.mxu0 %vm436_vm2, %v2298_v31  ;;  %v2337_v31 = vld [vmem:[%s2742_s3 + $0xc0] sm:$0xff] }
  0x9a   : > { %v885_v35 = vpop.permute.xlu0 %884  ;;  %2303 = vmatmul.mubr.msk.f32.vlgmr.msra.gmra.mxu1 %vm436_vm2, %v2301_v34  ;;  %963 = vmatprep.mubr.f32.mxu0 %v2425_v1 }
  0x9b   : > { %v1000_v36 = vpop.permute.xlu1 %999  ;;  %v890_v37 = vsel %vm888_vm6, %v885_v35, %v887_v32  ;;  %854 = vmatprep.mubr.f32.mxu1 %v2425_v1 }
  0x9c   : > { %929 = vmatprep.subr.mxu0 %v890_v37  ;;  %v2341_v37 = vld [vmem:[%s2742_s3 + $0xd0] sm:$0xff] }
  0x9e   : > { %v883_v41 = vpop.permute.xlu0 %882  ;;  %2304 = vmatmul.mubr.msk.f32.gmra.mxu1 %vm436_vm2, %v2302_v38 }
  0x9f   : > { %v998_v42 = vpop.permute.xlu1 %997  ;;  %v889_v44 = vsel %vm888_vm6, %v883_v41, %v885_v35  ;;  %1078 = vmatprep.mubr.f32.mxu1 %v2425_v1  ;;  %v2338_v35 = vld [vmem:[%s2742_s3 + $0xc8] sm:$0xf] }
  0xa0   : > { %930 = vmatpush1.msra.mxu0 %v889_v44  ;;  %v1004_v46 = vsel %vm1003_vm7, %v998_v42, %v1000_v36  ;;  %v2342_v42 = vld [vmem:[%s2742_s3 + $0xd8] sm:$0xf]  ;;  %v2345_v44 = vld [vmem:[%s2742_s3 + $0xe0] sm:$0xff] }
  0xa1   : > { %2307 = vmatmul.mubr.msk.f32.vlgmr.msra.gmra.mxu0 %vm436_vm2, %v2305_v43 }
  0xa2   : > { %v1002_v45 = vpop.permute.xlu0 %1001  ;;  %969 = vmatprep.mubr.f32.mxu0 %v2425_v1 }
  0xa3   : > { %v1117_v48 = vpop.permute.xlu1 %1116  ;;  %v1005_v49 = vsel %vm1003_vm7, %v1000_v36, %v1002_v45  ;;  %v2346_v45 = vld [vmem:[%s2742_s3 + $0xe8] sm:$0xf] }
  0xa4   : > { %1044 = vmatprep.subr.mxu1 %v1005_v49 }
  0xa5   : > { %1045 = vmatpush1.msra.mxu1 %v1004_v46  ;;  %2308 = vmatmul.mubr.msk.f32.gmra.mxu0 %vm436_vm2, %v2306_v47  ;;  %v2124_v46 = vld [vmem:[%s2743_s4 + $0x8] sm:$0xf] }
  0xa6   : > { %v1115_v51 = vpop.permute.xlu0 %1114  ;;  %2311 = vmatmul.mubr.msk.f32.vlgmr.msra.gmra.mxu1 %vm436_vm2, %v2309_v50  ;;  %1193 = vmatprep.mubr.f32.mxu0 %v2425_v1 }
  0xa7   : > { %v1330_v52 = vpop.permute.xlu1 %1329  ;;  %v1120_v53 = vsel %vm1118_vm8, %v1115_v51, %v1117_v48  ;;  %1084 = vmatprep.mubr.f32.mxu1 %v2425_v1  ;;  %2356 = vmatprep.subr.msk.mxu1 %vm397_vm0, %v2503_v5 }
  0xa8   : > { %1159 = vmatprep.subr.mxu0 %v1120_v53  ;;  %1260 = vmatpush1.msra.mxu1 %v2500_v4  ;;  %v2321_v4 = vld [vmem:[%s2742_s3 + $0x80] sm:$0xff] }
  0xa9   : > { %2132 = vperm.xlu1 %2400, %v2124_v46  }
  0xaa   : > { %v1113_v55 = vpop.permute.xlu0 %1112  ;;  %2312 = vmatmul.mubr.msk.f32.gmra.mxu1 %vm436_vm2, %v2310_v54 }
  0xab   : > { %v1328_v57 = vpop.permute.xlu1 %1327  ;;  %v1119_v58 = vsel %vm1118_vm8, %v1113_v55, %v1115_v51  ;;  %1293 = vmatprep.mubr.f32.mxu1 %v2425_v1 }
  0xac   : > { %1160 = vmatpush1.msra.mxu0 %v1119_v58  ;;  %v1334_v63 = vsel %vm1333_vm9, %v1328_v57, %v1330_v52 }
  0xad   : > { %2315 = vmatmul.mubr.msk.f32.vlgmr.msra.gmra.mxu0 %vm436_vm2, %v2313_v56 }
  0xae   : > { %1199 = vmatprep.mubr.f32.mxu0 %v2425_v1  ;;  %v1332_v61 = vpop.permute.xlu0 %1331  ;;  %2319 = vmatmul.mubr.msk.f32.vlgmr.msra.gmra.mxu1 %vm436_vm2, %v2317_v59 }
  0xaf   : > { %v1447_v62 = vpop.permute.xlu1 %1446  ;;  %v1335_v0 = vsel %vm1333_vm9, %v1330_v52, %v1332_v61  ;;  %1299 = vmatprep.mubr.f32.mxu1 %v2425_v1 }
  0xb0   : > { %1374 = vmatprep.subr.mxu0 %v1335_v0 }
  0xb1   : > { %2316 = vmatmul.mubr.msk.f32.gmra.mxu0 %vm436_vm2, %v2314_v60 }
  0xb2   : > { %1375 = vmatpush1.msra.mxu0 %v1334_v63  ;;  %2320 = vmatmul.mubr.msk.f32.gmra.mxu1 %vm436_vm2, %v2318_v2  ;;  %v1445_v3 = vpop.permute.xlu0 %1444 }
  0xb3   : > { %v1560_v5 = vpop.permute.xlu1 %1559  ;;  %1408 = vmatprep.mubr.f32.mxu0 %v2425_v1  ;;  %v1450_v6 = vsel %vm1448_vm10, %v1445_v3, %v1447_v62  ;;  %1523 = vmatprep.mubr.f32.mxu1 %v2425_v1 }
  0xb4   : > { %1489 = vmatprep.subr.mxu1 %v1450_v6 }
  0xb5   : > { %2323 = vmatmul.mubr.msk.f32.vlgmr.msra.gmra.mxu0 %vm436_vm2, %v2321_v4 }
  0xb6   : > { %v1443_v7 = vpop.permute.xlu0 %1442  ;;  %1414 = vmatprep.mubr.f32.mxu0 %v2425_v1 }
  0xb7   : > { %v1558_v9 = vpop.permute.xlu1 %1557  ;;  %v1449_v11 = vsel %vm1448_vm10, %v1443_v7, %v1445_v3 }
  0xb8   : > { %1490 = vmatpush1.msra.mxu1 %v1449_v11  ;;  %v1564_v13 = vsel %vm1563_vm11, %v1558_v9, %v1560_v5 }
  0xb9   : > { %2324 = vmatmul.mubr.msk.f32.gmra.mxu0 %vm436_vm2, %v2322_v8  ;;  %2327 = vmatmul.mubr.msk.f32.vlgmr.msra.gmra.mxu1 %vm436_vm2, %v2325_v10 }
  0xba   : > { %v1562_v12 = vpop.permute.xlu0 %1561  ;;  %1529 = vmatprep.mubr.f32.mxu1 %v2425_v1  ;;  %1638 = vmatprep.mubr.f32.mxu0 %v2425_v1 }
  0xbb   : > { %v1677_v15 = vpop.permute.xlu1 %1676  ;;  %v1565_v16 = vsel %vm1563_vm11, %v1560_v5, %v1562_v12 }
  0xbc   : > { %1604 = vmatprep.subr.mxu0 %v1565_v16 }
  0xbd   : > { %1605 = vmatpush1.msra.mxu0 %v1564_v13  ;;  %2328 = vmatmul.mubr.msk.f32.gmra.mxu1 %vm436_vm2, %v2326_v14 }
  0xbe   : > { %v1675_v18 = vpop.permute.xlu0 %1674  ;;  %2331 = vmatmul.mubr.msk.f32.vlgmr.msra.gmra.mxu0 %vm436_vm2, %v2329_v17  ;;  %1753 = vmatprep.mubr.f32.mxu1 %v2425_v1 }
  0xbf   : > { %v1790_v19 = vpop.permute.xlu1 %1789  ;;  %v1680_v20 = vsel %vm1678_vm12, %v1675_v18, %v1677_v15  ;;  %1644 = vmatprep.mubr.f32.mxu0 %v2425_v1 }
  0xc0   : > { %1719 = vmatprep.subr.mxu1 %v1680_v20 }
  0xc2   : > { %v1673_v22 = vpop.permute.xlu0 %1672  ;;  %2332 = vmatmul.mubr.msk.f32.gmra.mxu0 %vm436_vm2, %v2330_v21 }
  0xc3   : > { %v1788_v23 = vpop.permute.xlu1 %1787  ;;  %v1679_v25 = vsel %vm1678_vm12, %v1673_v22, %v1675_v18  ;;  %1868 = vmatprep.mubr.f32.mxu0 %v2425_v1 }
  0xc4   : > { %1720 = vmatpush1.msra.mxu1 %v1679_v25  ;;  %v1794_v27 = vsel %vm1793_vm13, %v1788_v23, %v1790_v19 }
  0xc5   : > { %2335 = vmatmul.mubr.msk.f32.vlgmr.msra.gmra.mxu1 %vm436_vm2, %v2333_v24 }
  0xc6   : > { %v1792_v26 = vpop.permute.xlu0 %1791  ;;  %1759 = vmatprep.mubr.f32.mxu1 %v2425_v1 }
  0xc7   : > { %v1907_v29 = vpop.permute.xlu1 %1906  ;;  %v1795_v30 = vsel %vm1793_vm13, %v1790_v19, %v1792_v26 }
  0xc8   : > { %1834 = vmatprep.subr.mxu0 %v1795_v30 }
  0xc9   : > { %1835 = vmatpush1.msra.mxu0 %v1794_v27  ;;  %2336 = vmatmul.mubr.msk.f32.gmra.mxu1 %vm436_vm2, %v2334_v28 }
  0xca   : > { %v1905_v32 = vpop.permute.xlu0 %1904  ;;  %2339 = vmatmul.mubr.msk.f32.vlgmr.msra.gmra.mxu0 %vm436_vm2, %v2337_v31  ;;  %1983 = vmatprep.mubr.f32.mxu1 %v2425_v1 }
  0xcb   : > { %v2020_v33 = vpop.permute.xlu1 %2019  ;;  %v1910_v34 = vsel %vm1908_vm14, %v1905_v32, %v1907_v29  ;;  %1874 = vmatprep.mubr.f32.mxu0 %v2425_v1 }
  0xcc   : > { %1949 = vmatprep.subr.mxu1 %v1910_v34 }
  0xce   : > { %v1903_v36 = vpop.permute.xlu0 %1902  ;;  %2340 = vmatmul.mubr.msk.f32.gmra.mxu0 %vm436_vm2, %v2338_v35 }
  0xcf   : > { %v1909_v38 = vsel %vm1908_vm14, %v1903_v36, %v1905_v32  ;;  %v2018_v39 = vpop.permute.xlu1 %2017  ;;  %2098 = vmatprep.mubr.f32.mxu0 %v2425_v1 }
  0xd0   : > { %1950 = vmatpush1.msra.mxu1 %v1909_v38  ;;  %v2024_v41 = vsel %vm2023_vm15, %v2018_v39, %v2020_v33 }
  0xd1   : > { %2343 = vmatmul.mubr.msk.f32.vlgmr.msra.gmra.mxu1 %vm436_vm2, %v2341_v37 }
  0xd2   : > { %v2022_v40 = vpop.permute.xlu0 %2021  ;;  %1989 = vmatprep.mubr.f32.mxu1 %v2425_v1 }
  0xd3   : > { %v2025_v43 = vsel %vm2023_vm15, %v2020_v33, %v2022_v40 }
  0xd4   : > { %2064 = vmatprep.subr.mxu0 %v2025_v43 }
  0xd5   : > { %2065 = vmatpush1.msra.mxu0 %v2024_v41  ;;  %2344 = vmatmul.mubr.msk.f32.gmra.mxu1 %vm436_vm2, %v2342_v42 }
  0xd6   : > { %2347 = vmatmul.mubr.msk.f32.vlgmr.msra.gmra.mxu0 %vm436_vm2, %v2345_v44 }
  0xd7   : > { %2104 = vmatprep.mubr.f32.mxu0 %v2425_v1 }
  0xda   : > { %2348 = vmatmul.mubr.msk.f32.gmra.mxu0 %vm436_vm2, %v2346_v45 }
 0x14a   : > { %v515_v47 = vpop.f32.mrf.mxu1  ;;  %v509_v50 = vpop.f32.mrf.mxu0 }
 0x14b   : > { %522 = vst [vmem:[#allocation3 + $0x18] sm:$0xf] %v515_v47 }
 0x14c   : > { %v517_v48 = vpop.f32.mrf.mxu1  ;;  %v511_v53 = vpop.f32.mrf.mxu0 }
 0x14d   : > { %523 = vst [vmem:[#allocation3 + $0x8] sm:$0xf] %v517_v48 }
 0x14e   : > { %v620_v49 = vpop.f32.mrf.mxu1 }
 0x14f   : > { %v631_v36 = vadd.f32 %v620_v49, %v509_v50 }
 0x150   : > { %v622_v51 = vpop.f32.mrf.mxu1 }
 0x151   : > { %v632_v41 = vadd.f32 %v622_v51, %v511_v53 }
 0x152   : > { %v526_v52 = vld [vmem:[#allocation3 + $0x18] sm:$0xf]  ;;  %v626_v1 = vpop.f32.mrf.mxu1 }
 0x153   : > { %v633_v54 = vadd.f32 %v626_v1, %v526_v52 }
 0x154   : > { %v527_v55 = vld [vmem:[#allocation3 + $0x8] sm:$0xf]  ;;  %v628_v56 = vpop.f32.mrf.mxu1 }
 0x155   : > { %637 = vst [vmem:[#allocation3 + $0x18] sm:$0xf] %v633_v54  ;;  %v634_v57 = vadd.f32 %v628_v56, %v527_v55  ;;  %v735_v58 = vpop.f32.mrf.mxu0 }
 0x156   : > { %v746_v42 = vadd.f32 %v735_v58, %v631_v36 }
 0x157   : > { %638 = vst [vmem:[#allocation3 + $0x8] sm:$0xf] %v634_v57  ;;  %v737_v59 = vpop.f32.mrf.mxu0 }
 0x158   : > { %v747_v46 = vadd.f32 %v737_v59, %v632_v41 }
 0x159   : > { %v741_v60 = vpop.f32.mrf.mxu0 }
 0x15a   : > { %v850_v61 = vpop.f32.mrf.mxu1 }
 0x15b   : > { %v743_v3 = vpop.f32.mrf.mxu0  ;;  %v861_v47 = vadd.f32 %v850_v61, %v746_v42 }
 0x15c   : > { %v641_v62 = vld [vmem:[#allocation3 + $0x18] sm:$0xf]  ;;  %v852_v63 = vpop.f32.mrf.mxu1 }
 0x15d   : > { %v748_v0 = vadd.f32 %v741_v60, %v641_v62  ;;  %v862_v52 = vadd.f32 %v852_v63, %v747_v46 }
 0x15e   : > { %v642_v2 = vld [vmem:[#allocation3 + $0x8] sm:$0xf]  ;;  %v856_v4 = vpop.f32.mrf.mxu1 }
 0x15f   : > { %752 = vst [vmem:[#allocation3 + $0x18] sm:$0xf] %v748_v0  ;;  %v749_v5 = vadd.f32 %v743_v3, %v642_v2 }
 0x160   : > { %v858_v7 = vpop.f32.mrf.mxu1 }
 0x161   : > { %753 = vst [vmem:[#allocation3 + $0x8] sm:$0xf] %v749_v5  ;;  %v965_v6 = vpop.f32.mrf.mxu0 }
 0x162   : > { %v976_v1 = vadd.f32 %v965_v6, %v861_v47 }
 0x163   : > { %v967_v8 = vpop.f32.mrf.mxu0 }
 0x164   : > { %v977_v50 = vadd.f32 %v967_v8, %v862_v52 }
 0x165   : > { %v971_v9 = vpop.f32.mrf.mxu0 }
 0x166   : > { %v756_v10 = vld [vmem:[#allocation3 + $0x18] sm:$0xf]  ;;  %v1080_v11 = vpop.f32.mrf.mxu1 }
 0x167   : > { %v863_v12 = vadd.f32 %v856_v4, %v756_v10  ;;  %v973_v16 = vpop.f32.mrf.mxu0  ;;  %v1091_v55 = vadd.f32 %v1080_v11, %v976_v1 }
 0x168   : > { %v757_v13 = vld [vmem:[#allocation3 + $0x8] sm:$0xf]  ;;  %v1082_v14 = vpop.f32.mrf.mxu1 }
 0x169   : > { %867 = vst [vmem:[#allocation3 + $0x18] sm:$0xf] %v863_v12  ;;  %v864_v15 = vadd.f32 %v858_v7, %v757_v13  ;;  %v1092_v51 = vadd.f32 %v1082_v14, %v977_v50 }
 0x16a   : > { %v1086_v17 = vpop.f32.mrf.mxu1 }
 0x16b   : > { %868 = vst [vmem:[#allocation3 + $0x8] sm:$0xf] %v864_v15 }
 0x16c   : > { %v1088_v18 = vpop.f32.mrf.mxu1 }
 0x16d   : > { %v1195_v19 = vpop.f32.mrf.mxu0 }
 0x16e   : > { %v1295_v20 = vpop.f32.mrf.mxu1  ;;  %v1206_v53 = vadd.f32 %v1195_v19, %v1091_v55 }
 0x16f   : > { %v1197_v21 = vpop.f32.mrf.mxu0 }
 0x170   : > { %v871_v22 = vld [vmem:[#allocation3 + $0x18] sm:$0xf]  ;;  %v1297_v23 = vpop.f32.mrf.mxu1  ;;  %v1207_v59 = vadd.f32 %v1197_v21, %v1092_v51  ;;  %v1306_v63 = vadd.f32 %v1295_v20, %v1206_v53 }
 0x171   : > { %v978_v24 = vadd.f32 %v971_v9, %v871_v22  ;;  %v1201_v25 = vpop.f32.mrf.mxu0 }
 0x172   : > { %v872_v26 = vld [vmem:[#allocation3 + $0x8] sm:$0xf]  ;;  %v1301_v27 = vpop.f32.mrf.mxu1  ;;  %v1307_v4 = vadd.f32 %v1297_v23, %v1207_v59 }
 0x173   : > { %982 = vst [vmem:[#allocation3 + $0x18] sm:$0xf] %v978_v24  ;;  %v979_v28 = vadd.f32 %v973_v16, %v872_v26  ;;  %v1203_v29 = vpop.f32.mrf.mxu0 }
 0x174   : > { %v1303_v30 = vpop.f32.mrf.mxu1 }
 0x175   : > { %983 = vst [vmem:[#allocation3 + $0x8] sm:$0xf] %v979_v28  ;;  %v1410_v31 = vpop.f32.mrf.mxu0  ;;  %v2128_v28 = vpop.permute.xlu0 %2127 }
 0x176   : > { %v1421_v5 = vadd.f32 %v1410_v31, %v1306_v63 }
 0x177   : > { %v1412_v32 = vpop.f32.mrf.mxu0 }
 0x178   : > { %v1422_v7 = vadd.f32 %v1412_v32, %v1307_v4 }
 0x179   : > { %v2699_v33 = vpop.f32.mrf.mxu0  ;;  %v1525_v34 = vpop.f32.mrf.mxu1 }
 0x17a   : > { %v986_v35 = vld [vmem:[#allocation3 + $0x18] sm:$0xf]  ;;  %v1536_v8 = vadd.f32 %v1525_v34, %v1421_v5 }
 0x17b   : > { %v1093_v37 = vadd.f32 %v1086_v17, %v986_v35  ;;  %v2701_v38 = vpop.f32.mrf.mxu0  ;;  %v1527_v39 = vpop.f32.mrf.mxu1 }
 0x17c   : > { %v987_v40 = vld [vmem:[#allocation3 + $0x8] sm:$0xf]  ;;  %v1537_v13 = vadd.f32 %v1527_v39, %v1422_v7 }
 0x17d   : > { %1097 = vst [vmem:[#allocation3 + $0x18] sm:$0xf] %v1093_v37  ;;  %v1094_v43 = vadd.f32 %v1088_v18, %v987_v40  ;;  %v2703_v44 = vpop.f32.mrf.mxu1 }
 0x17e   : > { %v1640_v45 = vpop.f32.mrf.mxu0 }
 0x17f   : > { %1098 = vst [vmem:[#allocation3 + $0x8] sm:$0xf] %v1094_v43  ;;  %v2705_v54 = vpop.f32.mrf.mxu1  ;;  %v1651_v14 = vadd.f32 %v1640_v45, %v1536_v8 }
 0x180   : > { %v1642_v48 = vpop.f32.mrf.mxu0 }
 0x181   : > { %v1652_v17 = vadd.f32 %v1642_v48, %v1537_v13 }
 0x182   : > { %v2707_v49 = vpop.f32.mrf.mxu0 }
 0x184   : > { %v1101_v56 = vld [vmem:[#allocation3 + $0x18] sm:$0xf]  ;;  %v2709_v62 = vpop.f32.mrf.mxu0 }
 0x185   : > { %v1208_v57 = vadd.f32 %v1201_v25, %v1101_v56  ;;  %v1755_v58 = vpop.f32.mrf.mxu1 }
 0x186   : > { %v1102_v60 = vld [vmem:[#allocation3 + $0x8] sm:$0xf]  ;;  %v1766_v18 = vadd.f32 %v1755_v58, %v1651_v14 }
 0x187   : > { %1212 = vst [vmem:[#allocation3 + $0x18] sm:$0xf] %v1208_v57  ;;  %v1209_v61 = vadd.f32 %v1203_v29, %v1102_v60  ;;  %v1757_v0 = vpop.f32.mrf.mxu1 }
 0x188   : > { %v1767_v21 = vadd.f32 %v1757_v0, %v1652_v17 }
 0x189   : > { %1213 = vst [vmem:[#allocation3 + $0x8] sm:$0xf] %v1209_v61  ;;  %v2711_v2 = vpop.f32.mrf.mxu1 }
 0x18a   : > { %v1870_v3 = vpop.f32.mrf.mxu0 }
 0x18b   : > { %v1763_v9 = vpop.f32.mrf.mxu1  ;;  %v1881_v22 = vadd.f32 %v1870_v3, %v1766_v18 }
 0x18c   : > { %v1872_v6 = vpop.f32.mrf.mxu0 }
 0x18d   : > { %v1882_v24 = vadd.f32 %v1872_v6, %v1767_v21  ;;  %v2133_v6 = vpop.permute.xlu1 %2132 }
 0x18e   : > { %v1216_v10 = vld [vmem:[#allocation3 + $0x18] sm:$0xf]  ;;  %v1876_v11 = vpop.f32.mrf.mxu0 }
 0x18f   : > { %v1308_v12 = vadd.f32 %v1301_v27, %v1216_v10 }
 0x190   : > { %v1217_v15 = vld [vmem:[#allocation3 + $0x8] sm:$0xf]  ;;  %v1878_v20 = vpop.f32.mrf.mxu0 }
 0x191   : > { %1312 = vst [vmem:[#allocation3 + $0x18] sm:$0xf] %v1308_v12  ;;  %v1309_v16 = vadd.f32 %v1303_v30, %v1217_v15  ;;  %v1985_v19 = vpop.f32.mrf.mxu1 }
 0x192   : > { %v1996_v25 = vadd.f32 %v1985_v19, %v1881_v22 }
 0x193   : > { %1313 = vst [vmem:[#allocation3 + $0x8] sm:$0xf] %v1309_v16  ;;  %v1987_v23 = vpop.f32.mrf.mxu1 }
 0x194   : > { %v1997_v29 = vadd.f32 %v1987_v23, %v1882_v24 }
 0x195   : > { %v1991_v58 = vpop.f32.mrf.mxu1 }
 0x196   : > { %v2100_v26 = vpop.f32.mrf.mxu0 }
 0x197   : > { %v2111_v27 = vadd.f32 %v2100_v26, %v1996_v25  ;;  %v1993_v61 = vpop.f32.mrf.mxu1 }
 0x198   : > { %v1316_v31 = vld [vmem:[#allocation3 + $0x18] sm:$0xf]  ;;  %v2102_v32 = vpop.f32.mrf.mxu0 }
 0x199   : > { %v1423_v30 = vadd.f32 %v2699_v33, %v1316_v31  ;;  %v2112_v34 = vadd.f32 %v2102_v32, %v1997_v29  ;;  %v2135_v35 = vadd.f32 %v2128_v28, %v2111_v27 }
 0x19a   : > { %v1317_v36 = vld [vmem:[#allocation3 + $0x8] sm:$0xf]  ;;  %v2106_v0 = vpop.f32.mrf.mxu0 }
 0x19b   : > { %1427 = vst [vmem:[#allocation3 + $0x18] sm:$0xf] %v1423_v30  ;;  %v1424_v37 = vadd.f32 %v2701_v38, %v1317_v36  ;;  %v2136_v39 = vadd.f32 %v2128_v28, %v2112_v34  ;;  %vm2139_vm0 = vcmp.ge.f32.partialorder %v2135_v35, 0.0  ;;  %v2143_v40 = vmul.f32 0.01, %v2135_v35 }
 0x19c   : > { %v2108_v4 = vpop.f32.mrf.mxu0 }
 0x19d   : > { %1428 = vst [vmem:[#allocation3 + $0x8] sm:$0xf] %v1424_v37  ;;  %vm2140_vm1 = vcmp.ge.f32.partialorder %v2136_v39, 0.0  ;;  %v2144_v41 = vmul.f32 0.01, %v2136_v39  ;;  %v2147_v33 = vsel %vm2139_vm0, %v2135_v35, %v2143_v40 }
 0x19e   : > { %2151 = vst [vmem:[%s2719_s11] sm:$0xff] %v2147_v33 }
 0x19f   : > { %v2148_v42 = vsel %vm2140_vm1, %v2136_v39, %v2144_v41 }
 0x1a0   : > { %2152 = vst [vmem:[%s2719_s11 + $0x8] sm:$0xff] %v2148_v42 }
 0x1a2   : > { %v1431_v43 = vld [vmem:[#allocation3 + $0x18] sm:$0xf] }
 0x1a3   : > { %v1538_v38 = vadd.f32 %v2703_v44, %v1431_v43 }
 0x1a4   : > { %v1432_v45 = vld [vmem:[#allocation3 + $0x8] sm:$0xf] }
 0x1a5   : > { %1542 = vst [vmem:[#allocation3 + $0x18] sm:$0xf] %v1538_v38  ;;  %v1539_v46 = vadd.f32 %v2705_v54, %v1432_v45 }
 0x1a7   : > { %1543 = vst [vmem:[#allocation3 + $0x8] sm:$0xf] %v1539_v46 }
 0x1ac   : > { %v1546_v47 = vld [vmem:[#allocation3 + $0x18] sm:$0xf] }
 0x1ad   : > { %v1653_v48 = vadd.f32 %v2707_v49, %v1546_v47 }
 0x1ae   : > { %v1547_v52 = vld [vmem:[#allocation3 + $0x8] sm:$0xf] }
 0x1af   : > { %1657 = vst [vmem:[#allocation3 + $0x18] sm:$0xf] %v1653_v48  ;;  %v1654_v1 = vadd.f32 %v2709_v62, %v1547_v52 }
 0x1b1   : > { %1658 = vst [vmem:[#allocation3 + $0x8] sm:$0xf] %v1654_v1 }
 0x1b6   : > { %v1661_v50 = vld [vmem:[#allocation3 + $0x18] sm:$0xf] }
 0x1b7   : > { %v1768_v55 = vadd.f32 %v2711_v2, %v1661_v50 }
 0x1b8   : > { %v1662_v56 = vld [vmem:[#allocation3 + $0x8] sm:$0xf] }
 0x1b9   : > { %1772 = vst [vmem:[#allocation3 + $0x18] sm:$0xf] %v1768_v55  ;;  %v1769_v51 = vadd.f32 %v1763_v9, %v1662_v56 }
 0x1bb   : > { %1773 = vst [vmem:[#allocation3 + $0x8] sm:$0xf] %v1769_v51 }
 0x1c0   : > { %v1776_v44 = vld [vmem:[#allocation3 + $0x18] sm:$0xf] }
 0x1c1   : > { %v1883_v53 = vadd.f32 %v1876_v11, %v1776_v44 }
 0x1c2   : > { %v1777_v57 = vld [vmem:[#allocation3 + $0x8] sm:$0xf] }
 0x1c3   : > { %1887 = vst [vmem:[#allocation3 + $0x18] sm:$0xf] %v1883_v53  ;;  %v1884_v54 = vadd.f32 %v1878_v20, %v1777_v57 }
 0x1c5   : > { %1888 = vst [vmem:[#allocation3 + $0x8] sm:$0xf] %v1884_v54 }
 0x1ca   : > { %v1891_v49 = vld [vmem:[#allocation3 + $0x18] sm:$0xf] }
 0x1cb   : > { %v1998_v60 = vadd.f32 %v1991_v58, %v1891_v49 }
 0x1cc   : > { %v1892_v59 = vld [vmem:[#allocation3 + $0x8] sm:$0xf] }
 0x1cd   : > { %2002 = vst [vmem:[#allocation3 + $0x18] sm:$0xf] %v1998_v60  ;;  %v1999_v62 = vadd.f32 %v1993_v61, %v1892_v59 }
 0x1cf   : > { %2003 = vst [vmem:[#allocation3 + $0x8] sm:$0xf] %v1999_v62 }
 0x1d4   : > { %v2006_v63 = vld [vmem:[#allocation3 + $0x18] sm:$0xf] }
 0x1d5   : > { %v2113_v2 = vadd.f32 %v2106_v0, %v2006_v63 }
 0x1d6   : > { %v2007_v3 = vld [vmem:[#allocation3 + $0x8] sm:$0xf] }
 0x1d7   : > { %2117 = vst [vmem:[#allocation3 + $0x18] sm:$0xf] %v2113_v2  ;;  %v2114_v5 = vadd.f32 %v2108_v4, %v2007_v3 }
 0x1d9   : > { %2118 = vst [vmem:[#allocation3 + $0x8] sm:$0xf] %v2114_v5 }
 0x1de   : > { %v2121_v7 = vld [vmem:[#allocation3 + $0x18] sm:$0xf] }
 0x1df   : > { %v2137_v8 = vadd.f32 %v2133_v6, %v2121_v7 }
 0x1e0   : > { %v2122_v9 = vld [vmem:[#allocation3 + $0x8] sm:$0xf] }
 0x1e1   : > { %v2138_v10 = vadd.f32 %v2133_v6, %v2122_v9  ;;  %vm2141_vm2 = vcmp.ge.f32.partialorder %v2137_v8, 0.0  ;;  %v2145_v11 = vmul.f32 0.01, %v2137_v8 }
 0x1e3   : > { %vm2142_vm3 = vcmp.ge.f32.partialorder %v2138_v10, 0.0  ;;  %v2146_v12 = vmul.f32 0.01, %v2138_v10  ;;  %v2149_v13 = vsel %vm2141_vm2, %v2137_v8, %v2145_v11 }
 0x1e4   : > { %2153 = vst [vmem:[%s2719_s11 + $0x10] sm:$0xf] %v2149_v13 }
 0x1e5   : > { %v2150_v14 = vsel %vm2142_vm3, %v2138_v10, %v2146_v12 }
 0x1e6   : > { %2154 = vst [vmem:[%s2719_s11 + $0x18] sm:$0xf] %v2150_v14 }
 0x1e7 PF: > { %s15_s0 = sadd.s32 1, %s2423_s0   ;;  %s2745_s18 = smov %s2419_s19 }
 0x1e8   : > { %p12_p5 = scmp.ge.s32.totalorder %s15_s0, 4   ;;  %s2746_s19 = smov %s2748_s2 }
 0x1ea   :  { %14 = sbr.rel (!%p12_p5) target bundleno = 2 (0x2), region = 90 }

</bundles_post_ra>
